<compile_context>
chip_gen: v7x
topology: tpu7x:2x2x1
jax: 0.10.0
libtpu: 0.0.40
codegen_flags: <defaults>
</compile_context>

<pallas_src>
import jax
import jax.numpy as jnp
from jax import lax
from jax.experimental import pallas as pl
from jax.experimental.pallas import tpu as pltpu

LANE = 128  # lane width / fused per-gate stride


def gru_rnnmodel_kernel(x_ref, wih_ref, whh_ref, bias_ref, wlin_ref, h0_ref,
                        out_ref, hT_ref, h_all_ref):
    Bp = h0_ref.shape[0]          # padded batch (multiple of 8)
    SBp = x_ref.shape[0]
    S = SBp // Bp

    biases = bias_ref[...]                                   # (3, 3*128), loaded once
    gi_bias = biases[0:1, :]                                 # fused r|z|n input bias
    b_hn = biases[1:2, 2 * LANE:3 * LANE]                    # (1, 128), real vals in [:H)
    b_lin = biases[2:3, 0:LANE]                              # (1, 128), real vals in [:V)

    # Hoisted, fused input projection over ALL timesteps: one matmul + one add.
    gi = (jnp.dot(x_ref[...], wih_ref[...],
                  preferred_element_type=jnp.float32) + gi_bias)   # (S*Bp, 3*128)

    whh = whh_ref[...]                                       # (128, 3*128), resident weight
    h = h0_ref[...]                                          # (Bp, 128), lanes >= H are zero

    for t in range(S):                                       # static unroll; S is small
        lo = t * Bp
        # Single fused recurrent matmul per step (r|z|n side by side in lanes).
        gh = jnp.dot(h, whh, preferred_element_type=jnp.float32)   # (Bp, 3*128)
        gi_t = gi[lo:lo + Bp, :]                                    # whole-tile sublane slice
        r = jax.nn.sigmoid(gi_t[:, 0:LANE] + gh[:, 0:LANE])
        z = jax.nn.sigmoid(gi_t[:, LANE:2 * LANE] + gh[:, LANE:2 * LANE])
        n = jnp.tanh(gi_t[:, 2 * LANE:3 * LANE]
                     + r * (gh[:, 2 * LANE:3 * LANE] + b_hn))
        h = (1.0 - z) * n + z * h
        h_all_ref[lo:lo + Bp, :] = h                                # tile-aligned store

    hT_ref[...] = h                                          # final hidden state, once

    # Hoisted output projection from VMEM scratch: one matmul, lane-dense store.
    logits = (jnp.dot(h_all_ref[...], wlin_ref[...],
                      preferred_element_type=jnp.float32) + b_lin)
    out_ref[...] = logits.astype(out_ref.dtype)


def rnn_model_forward(inputs, state, params, vocab_size):
    """inputs: (batch, seq) int32, state: (1, batch, hidden)."""
    (w_ih, w_hh, b_ih, b_hh, w_lin, b_lin) = params
    B, S = inputs.shape
    H = w_hh.shape[1]            # w_hh: (3H, H)
    V = vocab_size
    assert H <= LANE and V <= LANE, "toy-size kernel: H, V must fit one lane tile"
    Bp = ((B + 7) // 8) * 8      # pad batch to f32 sublane tile

    # One-hot, time-major, batch padded, flattened to (S*Bp, V).
    X = jax.nn.one_hot(inputs.T, V, dtype=jnp.float32)                 # (S, B, V)
    X = jnp.pad(X, ((0, 0), (0, Bp - B), (0, 0))).reshape(S * Bp, V)

    # Fused per-gate weights: gate g (PyTorch order r, z, n) occupies lanes
    # [g*128, g*128 + H); all other lanes / rows are zero.
    def fuse_gates(w):           # w: (3H, K) -> (K, 3*LANE)
        K = w.shape[1]
        cat = jnp.zeros((K, 3 * LANE), dtype=jnp.float32)
        for g in range(3):
            cat = cat.at[:, g * LANE:g * LANE + H].set(w[g * H:(g + 1) * H].T)
        return cat

    wih_cat = fuse_gates(w_ih)                                          # (V, 384)
    whh_cat = jnp.zeros((LANE, 3 * LANE), jnp.float32)
    whh_cat = whh_cat.at[:H, :].set(fuse_gates(w_hh))                   # (128, 384)

    # Packed biases: row0 = fused gi bias (b_ih+b_hh for r,z; b_ih for n),
    # row1 = b_hn (stays inside r*(.)), row2 = linear bias.
    biases = jnp.zeros((3, 3 * LANE), jnp.float32)
    biases = biases.at[0, 0:H].set(b_ih[:H] + b_hh[:H])
    biases = biases.at[0, LANE:LANE + H].set(b_ih[H:2 * H] + b_hh[H:2 * H])
    biases = biases.at[0, 2 * LANE:2 * LANE + H].set(b_ih[2 * H:])
    biases = biases.at[1, 2 * LANE:2 * LANE + H].set(b_hh[2 * H:])
    biases = biases.at[2, 0:V].set(b_lin)

    wlin_pad = jnp.zeros((LANE, LANE), jnp.float32).at[:H, :V].set(w_lin.T)
    h0_pad = jnp.zeros((Bp, LANE), jnp.float32).at[:B, :H].set(state[0])

    vmem = pl.BlockSpec(memory_space=pltpu.MemorySpace.VMEM)
    out_pad, hT_pad = pl.pallas_call(
        gru_rnnmodel_kernel,
        out_shape=(
            jax.ShapeDtypeStruct((S * Bp, LANE), jnp.float32),   # lane-dense logits
            jax.ShapeDtypeStruct((Bp, LANE), jnp.float32),       # padded final h
        ),
        in_specs=[vmem] * 6,
        out_specs=(vmem, vmem),
        scratch_shapes=[pltpu.VMEM((S * Bp, LANE), jnp.float32)],
    )(X, wih_cat, whh_cat, biases, wlin_pad, h0_pad)

    # Strip batch / lane padding; row order (t, b) matches Y.reshape(-1, H).
    output = out_pad.reshape(S, Bp, LANE)[:, :B, :V].reshape(S * B, V)
    new_state = hT_pad[:B, :H][None, :, :]                   # (1, B, H)
    return output, new_state


def reference_forward(inputs, state, params, vocab_size):
    """Pure-JAX reference (lax.scan GRU) for correctness checking."""
    (w_ih, w_hh, b_ih, b_hh, w_lin, b_lin) = params
    H = w_hh.shape[1]
    X = jax.nn.one_hot(inputs.T, vocab_size, dtype=jnp.float32)
    h0 = state[0]

    def step(h, x):
        gi = x @ w_ih.T + b_ih
        gh = h @ w_hh.T + b_hh
        i_r, i_z, i_n = gi[:, :H], gi[:, H:2 * H], gi[:, 2 * H:]
        h_r, h_z, h_n = gh[:, :H], gh[:, H:2 * H], gh[:, 2 * H:]
        r = jax.nn.sigmoid(i_r + h_r)
        z = jax.nn.sigmoid(i_z + h_z)
        n = jnp.tanh(i_n + r * h_n)
        h_new = (1.0 - z) * n + z * h
        return h_new, h_new

    hT, Y = lax.scan(step, h0, X)
    out = Y.reshape(-1, H) @ w_lin.T + b_lin
    return out, hT[None]


if __name__ == "__main__":
    vocab_size = 16
    num_hiddens = 32
    batch = 2
    seq = 8

    key = jax.random.PRNGKey(0)
    ks = jax.random.split(key, 8)
    scale = 1.0 / jnp.sqrt(num_hiddens)

    # GRU parameters (PyTorch layout: gates ordered r, z, n)
    w_ih = jax.random.uniform(ks[0], (3 * num_hiddens, vocab_size),
                              minval=-scale, maxval=scale, dtype=jnp.float32)
    w_hh = jax.random.uniform(ks[1], (3 * num_hiddens, num_hiddens),
                              minval=-scale, maxval=scale, dtype=jnp.float32)
    b_ih = jax.random.uniform(ks[2], (3 * num_hiddens,),
                              minval=-scale, maxval=scale, dtype=jnp.float32)
    b_hh = jax.random.uniform(ks[3], (3 * num_hiddens,),
                              minval=-scale, maxval=scale, dtype=jnp.float32)
    # Linear(num_hiddens -> vocab_size)
    w_lin = jax.random.uniform(ks[4], (vocab_size, num_hiddens),
                               minval=-scale, maxval=scale, dtype=jnp.float32)
    b_lin = jax.random.uniform(ks[5], (vocab_size,),
                               minval=-scale, maxval=scale, dtype=jnp.float32)
    params = (w_ih, w_hh, b_ih, b_hh, w_lin, b_lin)

    inputs = jax.random.randint(ks[6], (batch, seq), 0, vocab_size, dtype=jnp.int32)
    state = jnp.zeros((1, batch, num_hiddens), dtype=jnp.float32)  # begin_state

    out, new_state = rnn_model_forward(inputs, state, params, vocab_size)
    out = jax.block_until_ready(out)
    new_state = jax.block_until_ready(new_state)

    ref_out, ref_state = reference_forward(inputs, state, params, vocab_size)
    assert out.shape == (seq * batch, vocab_size)
    assert new_state.shape == (1, batch, num_hiddens)
    assert jnp.allclose(out, ref_out, atol=1e-5, rtol=1e-5)
    assert jnp.allclose(new_state, ref_state, atol=1e-5, rtol=1e-5)

    print("KERNEL_OK")
</pallas_src>

<mosaic_0001>
module attributes {stable_mosaic.version = 11 : i64} {
  func.func @gru_rnnmodel_kernel(%arg0: memref<64x16xf32, #tpu.memory_space<vmem>>, %arg1: memref<16x384xf32, #tpu.memory_space<vmem>>, %arg2: memref<128x384xf32, #tpu.memory_space<vmem>>, %arg3: memref<3x384xf32, #tpu.memory_space<vmem>>, %arg4: memref<128x128xf32, #tpu.memory_space<vmem>>, %arg5: memref<8x128xf32, #tpu.memory_space<vmem>>, %arg6: memref<64x128xf32, #tpu.memory_space<vmem>>, %arg7: memref<8x128xf32, #tpu.memory_space<vmem>>, %arg8: memref<64x128xf32, #tpu.memory_space<vmem>>) attributes {dimension_semantics = [], scalar_prefetch = 0 : i64, scratch_operands = 1 : i64, tpu.core_type = #tpu.core_type<tc>} {
    %c0 = arith.constant 0 : index
    %c0_0 = arith.constant 0 : index
    %0 = vector.load %arg3[%c0, %c0_0] : memref<3x384xf32, #tpu.memory_space<vmem>>, vector<3x384xf32>
    %1 = vector.extract_strided_slice %0 {offsets = [0, 0], sizes = [1, 384], strides = [1, 1]} : vector<3x384xf32> to vector<1x384xf32>
    %2 = vector.extract_strided_slice %0 {offsets = [1, 256], sizes = [1, 128], strides = [1, 1]} : vector<3x384xf32> to vector<1x128xf32>
    %3 = vector.extract_strided_slice %0 {offsets = [2, 0], sizes = [1, 128], strides = [1, 1]} : vector<3x384xf32> to vector<1x128xf32>
    %c0_1 = arith.constant 0 : index
    %c0_2 = arith.constant 0 : index
    %4 = vector.load %arg0[%c0_1, %c0_2] : memref<64x16xf32, #tpu.memory_space<vmem>>, vector<64x16xf32>
    %c0_3 = arith.constant 0 : index
    %c0_4 = arith.constant 0 : index
    %5 = vector.load %arg1[%c0_3, %c0_4] : memref<16x384xf32, #tpu.memory_space<vmem>>, vector<16x384xf32>
    %cst = arith.constant dense<0.000000e+00> : vector<64x384xf32>
    %6 = tpu.matmul %4, %5, %cst {dimension_numbers = #tpu.dot_dimension_numbers<[1], [0], [0], [1], [0, 0, 1, 1], [], []>} : vector<64x16xf32>, vector<16x384xf32>, vector<64x384xf32> -> vector<64x384xf32>
    %7 = vector.broadcast %1 : vector<1x384xf32> to vector<64x384xf32>
    %8 = arith.addf %6, %7 : vector<64x384xf32>
    %c0_5 = arith.constant 0 : index
    %c0_6 = arith.constant 0 : index
    %9 = vector.load %arg2[%c0_5, %c0_6] : memref<128x384xf32, #tpu.memory_space<vmem>>, vector<128x384xf32>
    %c0_7 = arith.constant 0 : index
    %c0_8 = arith.constant 0 : index
    %10 = vector.load %arg5[%c0_7, %c0_8] : memref<8x128xf32, #tpu.memory_space<vmem>>, vector<8x128xf32>
    %cst_9 = arith.constant dense<0.000000e+00> : vector<8x384xf32>
    %11 = tpu.matmul %10, %9, %cst_9 {dimension_numbers = #tpu.dot_dimension_numbers<[1], [0], [0], [1], [0, 0, 1, 1], [], []>} : vector<8x128xf32>, vector<128x384xf32>, vector<8x384xf32> -> vector<8x384xf32>
    %12 = vector.extract_strided_slice %8 {offsets = [0, 0], sizes = [8, 384], strides = [1, 1]} : vector<64x384xf32> to vector<8x384xf32>
    %13 = vector.extract_strided_slice %12 {offsets = [0, 0], sizes = [8, 128], strides = [1, 1]} : vector<8x384xf32> to vector<8x128xf32>
    %14 = vector.extract_strided_slice %11 {offsets = [0, 0], sizes = [8, 128], strides = [1, 1]} : vector<8x384xf32> to vector<8x128xf32>
    %15 = arith.addf %13, %14 : vector<8x128xf32>
    %16 = arith.negf %15 : vector<8x128xf32>
    %17 = math.exp %16 : vector<8x128xf32>
    %cst_10 = arith.constant 1.000000e+00 : f32
    %18 = vector.broadcast %cst_10 : f32 to vector<8x128xf32>
    %19 = arith.addf %18, %17 : vector<8x128xf32>
    %20 = arith.divf %18, %19 : vector<8x128xf32>
    %21 = vector.extract_strided_slice %12 {offsets = [0, 128], sizes = [8, 128], strides = [1, 1]} : vector<8x384xf32> to vector<8x128xf32>
    %22 = vector.extract_strided_slice %11 {offsets = [0, 128], sizes = [8, 128], strides = [1, 1]} : vector<8x384xf32> to vector<8x128xf32>
    %23 = arith.addf %21, %22 : vector<8x128xf32>
    %24 = arith.negf %23 : vector<8x128xf32>
    %25 = math.exp %24 : vector<8x128xf32>
    %cst_11 = arith.constant 1.000000e+00 : f32
    %26 = vector.broadcast %cst_11 : f32 to vector<8x128xf32>
    %27 = arith.addf %26, %25 : vector<8x128xf32>
    %28 = arith.divf %26, %27 : vector<8x128xf32>
    %29 = vector.extract_strided_slice %12 {offsets = [0, 256], sizes = [8, 128], strides = [1, 1]} : vector<8x384xf32> to vector<8x128xf32>
    %30 = vector.extract_strided_slice %11 {offsets = [0, 256], sizes = [8, 128], strides = [1, 1]} : vector<8x384xf32> to vector<8x128xf32>
    %31 = vector.broadcast %2 : vector<1x128xf32> to vector<8x128xf32>
    %32 = arith.addf %30, %31 : vector<8x128xf32>
    %33 = arith.mulf %20, %32 : vector<8x128xf32>
    %34 = arith.addf %29, %33 : vector<8x128xf32>
    %35 = math.tanh %34 : vector<8x128xf32>
    %cst_12 = arith.constant 1.000000e+00 : f32
    %36 = vector.broadcast %cst_12 : f32 to vector<8x128xf32>
    %37 = arith.subf %36, %28 : vector<8x128xf32>
    %38 = arith.mulf %37, %35 : vector<8x128xf32>
    %39 = arith.mulf %28, %10 : vector<8x128xf32>
    %40 = arith.addf %38, %39 : vector<8x128xf32>
    %c0_13 = arith.constant 0 : index
    %c0_14 = arith.constant 0 : index
    %41 = vector.load %arg8[%c0_13, %c0_14] : memref<64x128xf32, #tpu.memory_space<vmem>>, vector<8x128xf32>
    tpu.vector_store %arg8[%c0_13, %c0_14], %40 {strides = array<i32>} : memref<64x128xf32, #tpu.memory_space<vmem>>, vector<8x128xf32>,
    %cst_15 = arith.constant dense<0.000000e+00> : vector<8x384xf32>
    %42 = tpu.matmul %40, %9, %cst_15 {dimension_numbers = #tpu.dot_dimension_numbers<[1], [0], [0], [1], [0, 0, 1, 1], [], []>} : vector<8x128xf32>, vector<128x384xf32>, vector<8x384xf32> -> vector<8x384xf32>
    %43 = vector.extract_strided_slice %8 {offsets = [8, 0], sizes = [8, 384], strides = [1, 1]} : vector<64x384xf32> to vector<8x384xf32>
    %44 = vector.extract_strided_slice %43 {offsets = [0, 0], sizes = [8, 128], strides = [1, 1]} : vector<8x384xf32> to vector<8x128xf32>
    %45 = vector.extract_strided_slice %42 {offsets = [0, 0], sizes = [8, 128], strides = [1, 1]} : vector<8x384xf32> to vector<8x128xf32>
    %46 = arith.addf %44, %45 : vector<8x128xf32>
    %47 = arith.negf %46 : vector<8x128xf32>
    %48 = math.exp %47 : vector<8x128xf32>
    %cst_16 = arith.constant 1.000000e+00 : f32
    %49 = vector.broadcast %cst_16 : f32 to vector<8x128xf32>
    %50 = arith.addf %49, %48 : vector<8x128xf32>
    %51 = arith.divf %49, %50 : vector<8x128xf32>
    %52 = vector.extract_strided_slice %43 {offsets = [0, 128], sizes = [8, 128], strides = [1, 1]} : vector<8x384xf32> to vector<8x128xf32>
    %53 = vector.extract_strided_slice %42 {offsets = [0, 128], sizes = [8, 128], strides = [1, 1]} : vector<8x384xf32> to vector<8x128xf32>
    %54 = arith.addf %52, %53 : vector<8x128xf32>
    %55 = arith.negf %54 : vector<8x128xf32>
    %56 = math.exp %55 : vector<8x128xf32>
    %cst_17 = arith.constant 1.000000e+00 : f32
    %57 = vector.broadcast %cst_17 : f32 to vector<8x128xf32>
    %58 = arith.addf %57, %56 : vector<8x128xf32>
    %59 = arith.divf %57, %58 : vector<8x128xf32>
    %60 = vector.extract_strided_slice %43 {offsets = [0, 256], sizes = [8, 128], strides = [1, 1]} : vector<8x384xf32> to vector<8x128xf32>
    %61 = vector.extract_strided_slice %42 {offsets = [0, 256], sizes = [8, 128], strides = [1, 1]} : vector<8x384xf32> to vector<8x128xf32>
    %62 = vector.broadcast %2 : vector<1x128xf32> to vector<8x128xf32>
    %63 = arith.addf %61, %62 : vector<8x128xf32>
    %64 = arith.mulf %51, %63 : vector<8x128xf32>
    %65 = arith.addf %60, %64 : vector<8x128xf32>
    %66 = math.tanh %65 : vector<8x128xf32>
    %cst_18 = arith.constant 1.000000e+00 : f32
    %67 = vector.broadcast %cst_18 : f32 to vector<8x128xf32>
    %68 = arith.subf %67, %59 : vector<8x128xf32>
    %69 = arith.mulf %68, %66 : vector<8x128xf32>
    %70 = arith.mulf %59, %40 : vector<8x128xf32>
    %71 = arith.addf %69, %70 : vector<8x128xf32>
    %c8 = arith.constant 8 : index
    %c0_19 = arith.constant 0 : index
    %72 = vector.load %arg8[%c8, %c0_19] : memref<64x128xf32, #tpu.memory_space<vmem>>, vector<8x128xf32>
    tpu.vector_store %arg8[%c8, %c0_19], %71 {strides = array<i32>} : memref<64x128xf32, #tpu.memory_space<vmem>>, vector<8x128xf32>,
    %cst_20 = arith.constant dense<0.000000e+00> : vector<8x384xf32>
    %73 = tpu.matmul %71, %9, %cst_20 {dimension_numbers = #tpu.dot_dimension_numbers<[1], [0], [0], [1], [0, 0, 1, 1], [], []>} : vector<8x128xf32>, vector<128x384xf32>, vector<8x384xf32> -> vector<8x384xf32>
    %74 = vector.extract_strided_slice %8 {offsets = [16, 0], sizes = [8, 384], strides = [1, 1]} : vector<64x384xf32> to vector<8x384xf32>
    %75 = vector.extract_strided_slice %74 {offsets = [0, 0], sizes = [8, 128], strides = [1, 1]} : vector<8x384xf32> to vector<8x128xf32>
    %76 = vector.extract_strided_slice %73 {offsets = [0, 0], sizes = [8, 128], strides = [1, 1]} : vector<8x384xf32> to vector<8x128xf32>
    %77 = arith.addf %75, %76 : vector<8x128xf32>
    %78 = arith.negf %77 : vector<8x128xf32>
    %79 = math.exp %78 : vector<8x128xf32>
    %cst_21 = arith.constant 1.000000e+00 : f32
    %80 = vector.broadcast %cst_21 : f32 to vector<8x128xf32>
    %81 = arith.addf %80, %79 : vector<8x128xf32>
    %82 = arith.divf %80, %81 : vector<8x128xf32>
    %83 = vector.extract_strided_slice %74 {offsets = [0, 128], sizes = [8, 128], strides = [1, 1]} : vector<8x384xf32> to vector<8x128xf32>
    %84 = vector.extract_strided_slice %73 {offsets = [0, 128], sizes = [8, 128], strides = [1, 1]} : vector<8x384xf32> to vector<8x128xf32>
    %85 = arith.addf %83, %84 : vector<8x128xf32>
    %86 = arith.negf %85 : vector<8x128xf32>
    %87 = math.exp %86 : vector<8x128xf32>
    %cst_22 = arith.constant 1.000000e+00 : f32
    %88 = vector.broadcast %cst_22 : f32 to vector<8x128xf32>
    %89 = arith.addf %88, %87 : vector<8x128xf32>
    %90 = arith.divf %88, %89 : vector<8x128xf32>
    %91 = vector.extract_strided_slice %74 {offsets = [0, 256], sizes = [8, 128], strides = [1, 1]} : vector<8x384xf32> to vector<8x128xf32>
    %92 = vector.extract_strided_slice %73 {offsets = [0, 256], sizes = [8, 128], strides = [1, 1]} : vector<8x384xf32> to vector<8x128xf32>
    %93 = vector.broadcast %2 : vector<1x128xf32> to vector<8x128xf32>
    %94 = arith.addf %92, %93 : vector<8x128xf32>
    %95 = arith.mulf %82, %94 : vector<8x128xf32>
    %96 = arith.addf %91, %95 : vector<8x128xf32>
    %97 = math.tanh %96 : vector<8x128xf32>
    %cst_23 = arith.constant 1.000000e+00 : f32
    %98 = vector.broadcast %cst_23 : f32 to vector<8x128xf32>
    %99 = arith.subf %98, %90 : vector<8x128xf32>
    %100 = arith.mulf %99, %97 : vector<8x128xf32>
    %101 = arith.mulf %90, %71 : vector<8x128xf32>
    %102 = arith.addf %100, %101 : vector<8x128xf32>
    %c16 = arith.constant 16 : index
    %c0_24 = arith.constant 0 : index
    %103 = vector.load %arg8[%c16, %c0_24] : memref<64x128xf32, #tpu.memory_space<vmem>>, vector<8x128xf32>
    tpu.vector_store %arg8[%c16, %c0_24], %102 {strides = array<i32>} : memref<64x128xf32, #tpu.memory_space<vmem>>, vector<8x128xf32>,
    %cst_25 = arith.constant dense<0.000000e+00> : vector<8x384xf32>
    %104 = tpu.matmul %102, %9, %cst_25 {dimension_numbers = #tpu.dot_dimension_numbers<[1], [0], [0], [1], [0, 0, 1, 1], [], []>} : vector<8x128xf32>, vector<128x384xf32>, vector<8x384xf32> -> vector<8x384xf32>
    %105 = vector.extract_strided_slice %8 {offsets = [24, 0], sizes = [8, 384], strides = [1, 1]} : vector<64x384xf32> to vector<8x384xf32>
    %106 = vector.extract_strided_slice %105 {offsets = [0, 0], sizes = [8, 128], strides = [1, 1]} : vector<8x384xf32> to vector<8x128xf32>
    %107 = vector.extract_strided_slice %104 {offsets = [0, 0], sizes = [8, 128], strides = [1, 1]} : vector<8x384xf32> to vector<8x128xf32>
    %108 = arith.addf %106, %107 : vector<8x128xf32>
    %109 = arith.negf %108 : vector<8x128xf32>
    %110 = math.exp %109 : vector<8x128xf32>
    %cst_26 = arith.constant 1.000000e+00 : f32
    %111 = vector.broadcast %cst_26 : f32 to vector<8x128xf32>
    %112 = arith.addf %111, %110 : vector<8x128xf32>
    %113 = arith.divf %111, %112 : vector<8x128xf32>
    %114 = vector.extract_strided_slice %105 {offsets = [0, 128], sizes = [8, 128], strides = [1, 1]} : vector<8x384xf32> to vector<8x128xf32>
    %115 = vector.extract_strided_slice %104 {offsets = [0, 128], sizes = [8, 128], strides = [1, 1]} : vector<8x384xf32> to vector<8x128xf32>
    %116 = arith.addf %114, %115 : vector<8x128xf32>
    %117 = arith.negf %116 : vector<8x128xf32>
    %118 = math.exp %117 : vector<8x128xf32>
    %cst_27 = arith.constant 1.000000e+00 : f32
    %119 = vector.broadcast %cst_27 : f32 to vector<8x128xf32>
    %120 = arith.addf %119, %118 : vector<8x128xf32>
    %121 = arith.divf %119, %120 : vector<8x128xf32>
    %122 = vector.extract_strided_slice %105 {offsets = [0, 256], sizes = [8, 128], strides = [1, 1]} : vector<8x384xf32> to vector<8x128xf32>
    %123 = vector.extract_strided_slice %104 {offsets = [0, 256], sizes = [8, 128], strides = [1, 1]} : vector<8x384xf32> to vector<8x128xf32>
    %124 = vector.broadcast %2 : vector<1x128xf32> to vector<8x128xf32>
    %125 = arith.addf %123, %124 : vector<8x128xf32>
    %126 = arith.mulf %113, %125 : vector<8x128xf32>
    %127 = arith.addf %122, %126 : vector<8x128xf32>
    %128 = math.tanh %127 : vector<8x128xf32>
    %cst_28 = arith.constant 1.000000e+00 : f32
    %129 = vector.broadcast %cst_28 : f32 to vector<8x128xf32>
    %130 = arith.subf %129, %121 : vector<8x128xf32>
    %131 = arith.mulf %130, %128 : vector<8x128xf32>
    %132 = arith.mulf %121, %102 : vector<8x128xf32>
    %133 = arith.addf %131, %132 : vector<8x128xf32>
    %c24 = arith.constant 24 : index
    %c0_29 = arith.constant 0 : index
    %134 = vector.load %arg8[%c24, %c0_29] : memref<64x128xf32, #tpu.memory_space<vmem>>, vector<8x128xf32>
    tpu.vector_store %arg8[%c24, %c0_29], %133 {strides = array<i32>} : memref<64x128xf32, #tpu.memory_space<vmem>>, vector<8x128xf32>,
    %cst_30 = arith.constant dense<0.000000e+00> : vector<8x384xf32>
    %135 = tpu.matmul %133, %9, %cst_30 {dimension_numbers = #tpu.dot_dimension_numbers<[1], [0], [0], [1], [0, 0, 1, 1], [], []>} : vector<8x128xf32>, vector<128x384xf32>, vector<8x384xf32> -> vector<8x384xf32>
    %136 = vector.extract_strided_slice %8 {offsets = [32, 0], sizes = [8, 384], strides = [1, 1]} : vector<64x384xf32> to vector<8x384xf32>
    %137 = vector.extract_strided_slice %136 {offsets = [0, 0], sizes = [8, 128], strides = [1, 1]} : vector<8x384xf32> to vector<8x128xf32>
    %138 = vector.extract_strided_slice %135 {offsets = [0, 0], sizes = [8, 128], strides = [1, 1]} : vector<8x384xf32> to vector<8x128xf32>
    %139 = arith.addf %137, %138 : vector<8x128xf32>
    %140 = arith.negf %139 : vector<8x128xf32>
    %141 = math.exp %140 : vector<8x128xf32>
    %cst_31 = arith.constant 1.000000e+00 : f32
    %142 = vector.broadcast %cst_31 : f32 to vector<8x128xf32>
    %143 = arith.addf %142, %141 : vector<8x128xf32>
    %144 = arith.divf %142, %143 : vector<8x128xf32>
    %145 = vector.extract_strided_slice %136 {offsets = [0, 128], sizes = [8, 128], strides = [1, 1]} : vector<8x384xf32> to vector<8x128xf32>
    %146 = vector.extract_strided_slice %135 {offsets = [0, 128], sizes = [8, 128], strides = [1, 1]} : vector<8x384xf32> to vector<8x128xf32>
    %147 = arith.addf %145, %146 : vector<8x128xf32>
    %148 = arith.negf %147 : vector<8x128xf32>
    %149 = math.exp %148 : vector<8x128xf32>
    %cst_32 = arith.constant 1.000000e+00 : f32
    %150 = vector.broadcast %cst_32 : f32 to vector<8x128xf32>
    %151 = arith.addf %150, %149 : vector<8x128xf32>
    %152 = arith.divf %150, %151 : vector<8x128xf32>
    %153 = vector.extract_strided_slice %136 {offsets = [0, 256], sizes = [8, 128], strides = [1, 1]} : vector<8x384xf32> to vector<8x128xf32>
    %154 = vector.extract_strided_slice %135 {offsets = [0, 256], sizes = [8, 128], strides = [1, 1]} : vector<8x384xf32> to vector<8x128xf32>
    %155 = vector.broadcast %2 : vector<1x128xf32> to vector<8x128xf32>
    %156 = arith.addf %154, %155 : vector<8x128xf32>
    %157 = arith.mulf %144, %156 : vector<8x128xf32>
    %158 = arith.addf %153, %157 : vector<8x128xf32>
    %159 = math.tanh %158 : vector<8x128xf32>
    %cst_33 = arith.constant 1.000000e+00 : f32
    %160 = vector.broadcast %cst_33 : f32 to vector<8x128xf32>
    %161 = arith.subf %160, %152 : vector<8x128xf32>
    %162 = arith.mulf %161, %159 : vector<8x128xf32>
    %163 = arith.mulf %152, %133 : vector<8x128xf32>
    %164 = arith.addf %162, %163 : vector<8x128xf32>
    %c32 = arith.constant 32 : index
    %c0_34 = arith.constant 0 : index
    %165 = vector.load %arg8[%c32, %c0_34] : memref<64x128xf32, #tpu.memory_space<vmem>>, vector<8x128xf32>
    tpu.vector_store %arg8[%c32, %c0_34], %164 {strides = array<i32>} : memref<64x128xf32, #tpu.memory_space<vmem>>, vector<8x128xf32>,
    %cst_35 = arith.constant dense<0.000000e+00> : vector<8x384xf32>
    %166 = tpu.matmul %164, %9, %cst_35 {dimension_numbers = #tpu.dot_dimension_numbers<[1], [0], [0], [1], [0, 0, 1, 1], [], []>} : vector<8x128xf32>, vector<128x384xf32>, vector<8x384xf32> -> vector<8x384xf32>
    %167 = vector.extract_strided_slice %8 {offsets = [40, 0], sizes = [8, 384], strides = [1, 1]} : vector<64x384xf32> to vector<8x384xf32>
    %168 = vector.extract_strided_slice %167 {offsets = [0, 0], sizes = [8, 128], strides = [1, 1]} : vector<8x384xf32> to vector<8x128xf32>
    %169 = vector.extract_strided_slice %166 {offsets = [0, 0], sizes = [8, 128], strides = [1, 1]} : vector<8x384xf32> to vector<8x128xf32>
    %170 = arith.addf %168, %169 : vector<8x128xf32>
    %171 = arith.negf %170 : vector<8x128xf32>
    %172 = math.exp %171 : vector<8x128xf32>
    %cst_36 = arith.constant 1.000000e+00 : f32
    %173 = vector.broadcast %cst_36 : f32 to vector<8x128xf32>
    %174 = arith.addf %173, %172 : vector<8x128xf32>
    %175 = arith.divf %173, %174 : vector<8x128xf32>
    %176 = vector.extract_strided_slice %167 {offsets = [0, 128], sizes = [8, 128], strides = [1, 1]} : vector<8x384xf32> to vector<8x128xf32>
    %177 = vector.extract_strided_slice %166 {offsets = [0, 128], sizes = [8, 128], strides = [1, 1]} : vector<8x384xf32> to vector<8x128xf32>
    %178 = arith.addf %176, %177 : vector<8x128xf32>
    %179 = arith.negf %178 : vector<8x128xf32>
    %180 = math.exp %179 : vector<8x128xf32>
    %cst_37 = arith.constant 1.000000e+00 : f32
    %181 = vector.broadcast %cst_37 : f32 to vector<8x128xf32>
    %182 = arith.addf %181, %180 : vector<8x128xf32>
    %183 = arith.divf %181, %182 : vector<8x128xf32>
    %184 = vector.extract_strided_slice %167 {offsets = [0, 256], sizes = [8, 128], strides = [1, 1]} : vector<8x384xf32> to vector<8x128xf32>
    %185 = vector.extract_strided_slice %166 {offsets = [0, 256], sizes = [8, 128], strides = [1, 1]} : vector<8x384xf32> to vector<8x128xf32>
    %186 = vector.broadcast %2 : vector<1x128xf32> to vector<8x128xf32>
    %187 = arith.addf %185, %186 : vector<8x128xf32>
    %188 = arith.mulf %175, %187 : vector<8x128xf32>
    %189 = arith.addf %184, %188 : vector<8x128xf32>
    %190 = math.tanh %189 : vector<8x128xf32>
    %cst_38 = arith.constant 1.000000e+00 : f32
    %191 = vector.broadcast %cst_38 : f32 to vector<8x128xf32>
    %192 = arith.subf %191, %183 : vector<8x128xf32>
    %193 = arith.mulf %192, %190 : vector<8x128xf32>
    %194 = arith.mulf %183, %164 : vector<8x128xf32>
    %195 = arith.addf %193, %194 : vector<8x128xf32>
    %c40 = arith.constant 40 : index
    %c0_39 = arith.constant 0 : index
    %196 = vector.load %arg8[%c40, %c0_39] : memref<64x128xf32, #tpu.memory_space<vmem>>, vector<8x128xf32>
    tpu.vector_store %arg8[%c40, %c0_39], %195 {strides = array<i32>} : memref<64x128xf32, #tpu.memory_space<vmem>>, vector<8x128xf32>,
    %cst_40 = arith.constant dense<0.000000e+00> : vector<8x384xf32>
    %197 = tpu.matmul %195, %9, %cst_40 {dimension_numbers = #tpu.dot_dimension_numbers<[1], [0], [0], [1], [0, 0, 1, 1], [], []>} : vector<8x128xf32>, vector<128x384xf32>, vector<8x384xf32> -> vector<8x384xf32>
    %198 = vector.extract_strided_slice %8 {offsets = [48, 0], sizes = [8, 384], strides = [1, 1]} : vector<64x384xf32> to vector<8x384xf32>
    %199 = vector.extract_strided_slice %198 {offsets = [0, 0], sizes = [8, 128], strides = [1, 1]} : vector<8x384xf32> to vector<8x128xf32>
    %200 = vector.extract_strided_slice %197 {offsets = [0, 0], sizes = [8, 128], strides = [1, 1]} : vector<8x384xf32> to vector<8x128xf32>
    %201 = arith.addf %199, %200 : vector<8x128xf32>
    %202 = arith.negf %201 : vector<8x128xf32>
    %203 = math.exp %202 : vector<8x128xf32>
    %cst_41 = arith.constant 1.000000e+00 : f32
    %204 = vector.broadcast %cst_41 : f32 to vector<8x128xf32>
    %205 = arith.addf %204, %203 : vector<8x128xf32>
    %206 = arith.divf %204, %205 : vector<8x128xf32>
    %207 = vector.extract_strided_slice %198 {offsets = [0, 128], sizes = [8, 128], strides = [1, 1]} : vector<8x384xf32> to vector<8x128xf32>
    %208 = vector.extract_strided_slice %197 {offsets = [0, 128], sizes = [8, 128], strides = [1, 1]} : vector<8x384xf32> to vector<8x128xf32>
    %209 = arith.addf %207, %208 : vector<8x128xf32>
    %210 = arith.negf %209 : vector<8x128xf32>
    %211 = math.exp %210 : vector<8x128xf32>
    %cst_42 = arith.constant 1.000000e+00 : f32
    %212 = vector.broadcast %cst_42 : f32 to vector<8x128xf32>
    %213 = arith.addf %212, %211 : vector<8x128xf32>
    %214 = arith.divf %212, %213 : vector<8x128xf32>
    %215 = vector.extract_strided_slice %198 {offsets = [0, 256], sizes = [8, 128], strides = [1, 1]} : vector<8x384xf32> to vector<8x128xf32>
    %216 = vector.extract_strided_slice %197 {offsets = [0, 256], sizes = [8, 128], strides = [1, 1]} : vector<8x384xf32> to vector<8x128xf32>
    %217 = vector.broadcast %2 : vector<1x128xf32> to vector<8x128xf32>
    %218 = arith.addf %216, %217 : vector<8x128xf32>
    %219 = arith.mulf %206, %218 : vector<8x128xf32>
    %220 = arith.addf %215, %219 : vector<8x128xf32>
    %221 = math.tanh %220 : vector<8x128xf32>
    %cst_43 = arith.constant 1.000000e+00 : f32
    %222 = vector.broadcast %cst_43 : f32 to vector<8x128xf32>
    %223 = arith.subf %222, %214 : vector<8x128xf32>
    %224 = arith.mulf %223, %221 : vector<8x128xf32>
    %225 = arith.mulf %214, %195 : vector<8x128xf32>
    %226 = arith.addf %224, %225 : vector<8x128xf32>
    %c48 = arith.constant 48 : index
    %c0_44 = arith.constant 0 : index
    %227 = vector.load %arg8[%c48, %c0_44] : memref<64x128xf32, #tpu.memory_space<vmem>>, vector<8x128xf32>
    tpu.vector_store %arg8[%c48, %c0_44], %226 {strides = array<i32>} : memref<64x128xf32, #tpu.memory_space<vmem>>, vector<8x128xf32>,
    %cst_45 = arith.constant dense<0.000000e+00> : vector<8x384xf32>
    %228 = tpu.matmul %226, %9, %cst_45 {dimension_numbers = #tpu.dot_dimension_numbers<[1], [0], [0], [1], [0, 0, 1, 1], [], []>} : vector<8x128xf32>, vector<128x384xf32>, vector<8x384xf32> -> vector<8x384xf32>
    %229 = vector.extract_strided_slice %8 {offsets = [56, 0], sizes = [8, 384], strides = [1, 1]} : vector<64x384xf32> to vector<8x384xf32>
    %230 = vector.extract_strided_slice %229 {offsets = [0, 0], sizes = [8, 128], strides = [1, 1]} : vector<8x384xf32> to vector<8x128xf32>
    %231 = vector.extract_strided_slice %228 {offsets = [0, 0], sizes = [8, 128], strides = [1, 1]} : vector<8x384xf32> to vector<8x128xf32>
    %232 = arith.addf %230, %231 : vector<8x128xf32>
    %233 = arith.negf %232 : vector<8x128xf32>
    %234 = math.exp %233 : vector<8x128xf32>
    %cst_46 = arith.constant 1.000000e+00 : f32
    %235 = vector.broadcast %cst_46 : f32 to vector<8x128xf32>
    %236 = arith.addf %235, %234 : vector<8x128xf32>
    %237 = arith.divf %235, %236 : vector<8x128xf32>
    %238 = vector.extract_strided_slice %229 {offsets = [0, 128], sizes = [8, 128], strides = [1, 1]} : vector<8x384xf32> to vector<8x128xf32>
    %239 = vector.extract_strided_slice %228 {offsets = [0, 128], sizes = [8, 128], strides = [1, 1]} : vector<8x384xf32> to vector<8x128xf32>
    %240 = arith.addf %238, %239 : vector<8x128xf32>
    %241 = arith.negf %240 : vector<8x128xf32>
    %242 = math.exp %241 : vector<8x128xf32>
    %cst_47 = arith.constant 1.000000e+00 : f32
    %243 = vector.broadcast %cst_47 : f32 to vector<8x128xf32>
    %244 = arith.addf %243, %242 : vector<8x128xf32>
    %245 = arith.divf %243, %244 : vector<8x128xf32>
    %246 = vector.extract_strided_slice %229 {offsets = [0, 256], sizes = [8, 128], strides = [1, 1]} : vector<8x384xf32> to vector<8x128xf32>
    %247 = vector.extract_strided_slice %228 {offsets = [0, 256], sizes = [8, 128], strides = [1, 1]} : vector<8x384xf32> to vector<8x128xf32>
    %248 = vector.broadcast %2 : vector<1x128xf32> to vector<8x128xf32>
    %249 = arith.addf %247, %248 : vector<8x128xf32>
    %250 = arith.mulf %237, %249 : vector<8x128xf32>
    %251 = arith.addf %246, %250 : vector<8x128xf32>
    %252 = math.tanh %251 : vector<8x128xf32>
    %cst_48 = arith.constant 1.000000e+00 : f32
    %253 = vector.broadcast %cst_48 : f32 to vector<8x128xf32>
    %254 = arith.subf %253, %245 : vector<8x128xf32>
    %255 = arith.mulf %254, %252 : vector<8x128xf32>
    %256 = arith.mulf %245, %226 : vector<8x128xf32>
    %257 = arith.addf %255, %256 : vector<8x128xf32>
    %c56 = arith.constant 56 : index
    %c0_49 = arith.constant 0 : index
    %258 = vector.load %arg8[%c56, %c0_49] : memref<64x128xf32, #tpu.memory_space<vmem>>, vector<8x128xf32>
    tpu.vector_store %arg8[%c56, %c0_49], %257 {strides = array<i32>} : memref<64x128xf32, #tpu.memory_space<vmem>>, vector<8x128xf32>,
    %c0_50 = arith.constant 0 : index
    %c0_51 = arith.constant 0 : index
    %259 = vector.load %arg7[%c0_50, %c0_51] : memref<8x128xf32, #tpu.memory_space<vmem>>, vector<8x128xf32>
    tpu.vector_store %arg7[%c0_50, %c0_51], %257 {strides = array<i32>} : memref<8x128xf32, #tpu.memory_space<vmem>>, vector<8x128xf32>,
    %c0_52 = arith.constant 0 : index
    %c0_53 = arith.constant 0 : index
    %260 = vector.load %arg8[%c0_52, %c0_53] : memref<64x128xf32, #tpu.memory_space<vmem>>, vector<64x128xf32>
    %c0_54 = arith.constant 0 : index
    %c0_55 = arith.constant 0 : index
    %261 = vector.load %arg4[%c0_54, %c0_55] : memref<128x128xf32, #tpu.memory_space<vmem>>, vector<128x128xf32>
    %cst_56 = arith.constant dense<0.000000e+00> : vector<64x128xf32>
    %262 = tpu.matmul %260, %261, %cst_56 {dimension_numbers = #tpu.dot_dimension_numbers<[1], [0], [0], [1], [0, 0, 1, 1], [], []>} : vector<64x128xf32>, vector<128x128xf32>, vector<64x128xf32> -> vector<64x128xf32>
    %263 = vector.broadcast %3 : vector<1x128xf32> to vector<64x128xf32>
    %264 = arith.addf %262, %263 : vector<64x128xf32>
    %c0_57 = arith.constant 0 : index
    %c0_58 = arith.constant 0 : index
    %265 = vector.load %arg6[%c0_57, %c0_58] : memref<64x128xf32, #tpu.memory_space<vmem>>, vector<64x128xf32>
    tpu.vector_store %arg6[%c0_57, %c0_58], %264 {strides = array<i32>} : memref<64x128xf32, #tpu.memory_space<vmem>>, vector<64x128xf32>,
    return
  }
}

</mosaic_0001>

<bundles_post_ra>
// kernel: tpu_custom_call.1
= control target key start
LH: loop header
LB: loop body
LE: loop exit
PB: predicated region body
PF: predicated region fallthrough
CT: control target
= control target key end

     0   :  { %13 = vsyncpa [#allocation4], 0  ;;  %s3780_s0 = inlined_call_operand.vmem [shape: f32[64,16], index: 0, kind: input, shape index: {}]   ;;  %s3781_s1 = inlined_call_operand.vmem [shape: f32[16,384], index: 1, kind: input, shape index: {}]   ;;  %s3782_s2 = inlined_call_operand.hbm [shape: f32[128,384], index: 2, kind: input, shape index: {}]   ;;  %s3783_s3 = inlined_call_operand.vmem [shape: f32[3,384], index: 3, kind: input, shape index: {}]   ;;  %s3784_s4 = inlined_call_operand.hbm [shape: f32[128,128], index: 4, kind: input, shape index: {}]   ;;  %s3785_s5 = inlined_call_operand.vmem [shape: f32[8,128], index: 5, kind: input, shape index: {}]   ;;  %s3786_s6 = inlined_call_operand.hbm [shape: f32[64,128], index: 6, kind: output, shape index: {0}]   ;;  %s3787_s7 = inlined_call_operand.hbm [shape: f32[8,128], index: 7, kind: output, shape index: {1}]  }
   0x1   :  { %14 = vsyncpa [#allocation7], 0 }
   0x2   :  { %15 = vsyncpa [#allocation5], 0 }
   0x3   :  { %16 = vsyncpa [#allocation10], 0  ;;  %s3131_s24 = smov [#allocation3]   ;;  %s3035_s28 = scalar_lea.hbm %s3782_s2, 6144 }
   0x4   :  { %s26_s25 = sshll.u32 %s3131_s24, 4  ;;  %p3036_p0 = scmp.ne.s32.totalorder %s3782_s2, %s3035_s28  ;;  %s27_s25 = int_to_ptr.vmem [resolvable:$true] %s26_s25 }
   0x5   :  { %p3039_p1 = scmp.lt.u32.totalorder %s3035_s28, %s3782_s2 }
   0x7   :  { %p3041_p2 = pnand %p3039_p1, %p3036_p0 }
   0x9   :  { %3044 = shalt.err (!%p3041_p2)
}
   0xa   :  { %s3045_s10 = scalar_lea.vmem %s27_s25, 6144  ;;  %p3050_p4 = scmp.lt.s32.totalorder %s27_s25, %s27_s25 }
   0xb   :  { %p3046_p3 = scmp.ne.s32.totalorder %s27_s25, %s3045_s10  ;;  %p3051_p5 = scmp.lt.s32.totalorder %s3045_s10, %s3045_s10 }
   0xd   :  { %p3052_p6 = por %p3051_p5, %p3050_p4 }
   0xf   :  { %p3053_p7 = pnand %p3052_p6, %p3046_p3 }
  0x11   :  { %3056 = shalt.err (!%p3053_p7)
}
  0x12   :  { %s3132_s11 = smov 384   ;;  %s3133_s12 = smov 24  }
  0x13   :  { %32 = dma.hbm_to_vmem [thread:$0]  %s3782_s2, 6144, %s27_s25, [#allocation4], %s3132_s11, %s3132_s11, %s3133_s12  }
  0x14   :  { %s3134_s15 = smov [#allocation6]   ;;  %s3057_s19 = scalar_lea.hbm %s3784_s4, 2048 }
  0x15   :  { %s40_s16 = sshll.u32 %s3134_s15, 4  ;;  %p3058_p8 = scmp.ne.s32.totalorder %s3784_s4, %s3057_s19  ;;  %s41_s16 = int_to_ptr.vmem [resolvable:$true] %s40_s16 }
  0x16   :  { %p3061_p9 = scmp.lt.u32.totalorder %s3057_s19, %s3784_s4 }
  0x18   :  { %p3063_p10 = pnand %p3061_p9, %p3058_p8 }
  0x1a   :  { %3066 = shalt.err (!%p3063_p10)
}
  0x1b   :  { %s3067_s24 = scalar_lea.vmem %s41_s16, 2048  ;;  %p3072_p12 = scmp.lt.s32.totalorder %s41_s16, %s41_s16 }
  0x1c   :  { %p3068_p11 = scmp.ne.s32.totalorder %s41_s16, %s3067_s24  ;;  %p3073_p13 = scmp.lt.s32.totalorder %s3067_s24, %s3067_s24 }
  0x1e   :  { %p3074_p0 = por %p3073_p13, %p3072_p12 }
  0x20   :  { %p3075_p1 = pnand %p3074_p0, %p3068_p11 }
  0x22   :  { %3078 = shalt.err (!%p3075_p1)
}
  0x23   :  { %s3135_s2 = smov 128   ;;  %s3136_s25 = smov 8  }
  0x24   :  { %46 = dma.hbm_to_vmem [thread:$0]  %s3784_s4, 2048, %s41_s16, [#allocation7], %s3135_s2, %s3135_s2, %s3136_s25  }
  0x25   :  { %3123 = dma.done.wait [#allocation4], 6144  }
  0x26   :  { %3124 = vsyncadd [#allocation4], 4294961152 }
  0x27   :  { %3125 = dma.done.wait [#allocation7], 2048  }
  0x28   :  { %3126 = vsyncadd [#allocation7], 4294965248  ;;  %v3137_v0 = vmov 0.0   ;;  %vm100_vm0 = vcmask 130048   ;;  %v67_v1 = vld [vmem:[%s3781_s1 + $0x10] sm:$0xff]  ;;  %v70_v2 = vld [vmem:[%s3781_s1 + $0x28] sm:$0xff] }
  0x29   :  { %189 = vmatprep.mubr.f32.mxu0 %v3137_v0  ;;  %v3219_v3 = vld [vmem:[%s3780_s0] sm:$0xff]  ;;  %v2428_v4 = vpack.c.bf16 %v70_v2, %v67_v1  ;;  %v344_v5 = vld [vmem:[#allocation3 + $0x8] sm:$0xff]  ;;  %v347_v6 = vld [vmem:[#allocation3 + $0x20] sm:$0xff]  ;;  %vm3139_vm1 = vmmov 0  }
  0x2a   :  { %2088 = vmatprep.mubr.msk.f32.mxu1 %vm100_vm0, %v3219_v3  ;;  %v3223_v7 = vpack.c.bf16 %v347_v6, %v344_v5  ;;  %v343_v8 = vld [vmem:[#allocation3] sm:$0xff]  ;;  %v346_v9 = vld [vmem:[#allocation3 + $0x18] sm:$0xff]  ;;  %v353_v11 = vld [vmem:[#allocation3 + $0x50] sm:$0xff] }
  0x2b   :  { %v350_v10 = vld [vmem:[#allocation3 + $0x38] sm:$0xff]  ;;  %2429 = vmatprep.subr.bf16.mxu1 %v2428_v4  ;;  %v3230_v13 = vpack.c.bf16 %v346_v9, %v343_v8  ;;  %v349_v15 = vld [vmem:[#allocation3 + $0x30] sm:$0xff]  ;;  %v352_v16 = vld [vmem:[#allocation3 + $0x48] sm:$0xff]  ;;  %v3138_v8 = vmov 0.0|0.0  }
  0x2c   :  { %2431 = vmatpush3.bf16.msra.mxu1 %v2428_v4  ;;  %v3228_v12 = vld [vmem:[%s3780_s0 + $0x8] sm:$0xff]  ;;  %v3233_v14 = vpack.c.bf16 %v353_v11, %v350_v10  ;;  %v356_v17 = vld [vmem:[#allocation3 + $0x68] sm:$0xff]  ;;  %v359_v18 = vld [vmem:[#allocation3 + $0x80] sm:$0xff]  ;;  %v3238_v19 = vpack.c.bf16 %v352_v16, %v349_v15 }
  0x2d   :  { %2433 = vmatprep.subr.bf16.mxu1 %v3223_v7  ;;  %v3243_v20 = vld [vmem:[%s3780_s0 + $0x10] sm:$0xff]  ;;  %v3248_v21 = vld [vmem:[%s3780_s0 + $0x18] sm:$0xff]  ;;  %v3251_v22 = vpack.c.bf16 %v359_v18, %v356_v17  ;;  %v358_v24 = vld [vmem:[#allocation3 + $0x78] sm:$0xff] }
  0x2e   :  { %v355_v23 = vld [vmem:[#allocation3 + $0x60] sm:$0xff]  ;;  %v362_v25 = vld [vmem:[#allocation3 + $0x98] sm:$0xff]  ;;  %v365_v26 = vld [vmem:[#allocation3 + $0xb0] sm:$0xff] }
  0x2f   :  { %2089 = vmatmul.mubr.msk.f32.vlgmr.msra.gmra.mrb[0].mxu1 %vm100_vm0, %v3228_v12  ;;  %v3258_v27 = vld [vmem:[%s3780_s0 + $0x20] sm:$0xff]  ;;  %v3265_v28 = vld [vmem:[%s3780_s0 + $0x28] sm:$0xff]  ;;  %v3268_v29 = vpack.c.bf16 %v358_v24, %v355_v23  ;;  %v3282_v33 = vpack.c.bf16 %v365_v26, %v362_v25  ;;  %v364_v35 = vld [vmem:[#allocation3 + $0xa8] sm:$0xff] }
  0x30   :  { %2435 = vmatpush1.bf16.msra.mxu1 %v3230_v13  ;;  %2091 = vmatprep.mubr.msk.f32.mxu1 %vm100_vm0, %v3243_v20  ;;  %v66_v30 = vld [vmem:[%s3781_s1 + $0x8] sm:$0xff]  ;;  %v69_v31 = vld [vmem:[%s3781_s1 + $0x20] sm:$0xff]  ;;  %v68_v37 = vld [vmem:[%s3781_s1 + $0x18] sm:$0xff] }
  0x31   :  { %2437 = vmatprep.subr.bf16.mxu1 %v3233_v14  ;;  %v65_v32 = vld [vmem:[%s3781_s1] sm:$0xff]  ;;  %v2424_v36 = vpack.c.bf16 %v69_v31, %v66_v30  ;;  %v368_v38 = vld [vmem:[#allocation3 + $0xc8] sm:$0xff]  ;;  %v371_v39 = vld [vmem:[#allocation3 + $0xe0] sm:$0xff] }
  0x32   :  { %v361_v34 = vld [vmem:[#allocation3 + $0x90] sm:$0xff]  ;;  %v2426_v40 = vpack.c.bf16 %v68_v37, %v65_v32  ;;  %v3290_v41 = vld [vmem:[%s3780_s0 + $0x30] sm:$0xff]  ;;  %v3300_v43 = vld [vmem:[%s3780_s0 + $0x38] sm:$0xff]  ;;  %v3303_v44 = vpack.c.bf16 %v371_v39, %v368_v38 }
  0x33   :  { %2092 = vmatmul.mubr.msk.f32.gmra.mrb[2].mxu1 %vm100_vm0, %v3248_v21  ;;  %2425 = vmatprep.subr.bf16.mxu0 %v2424_v36  ;;  %v3295_v42 = vpack.c.bf16 %v364_v35, %v361_v34  ;;  %v367_v45 = vld [vmem:[#allocation3 + $0xc0] sm:$0xff]  ;;  %v370_v46 = vld [vmem:[#allocation3 + $0xd8] sm:$0xff]  ;;  %v377_v48 = vld [vmem:[#allocation3 + $0x110] sm:$0xff]  ;;  %v73_v36 = vlaneseq }
  0x34   :  { %2439 = vmatpush1.bf16.msra.mxu1 %v3238_v19  ;;  %2094 = vmatprep.mubr.msk.f32.mxu1 %vm100_vm0, %v3258_v27  ;;  %v374_v47 = vld [vmem:[#allocation3 + $0xf8] sm:$0xff]  ;;  %v3313_v49 = vpack.c.bf16 %v370_v46, %v367_v45  ;;  %v373_v51 = vld [vmem:[#allocation3 + $0xf0] sm:$0xff]  ;;  %v376_v52 = vld [vmem:[#allocation3 + $0x108] sm:$0xff] }
  0x35   :  { %2441 = vmatprep.subr.bf16.mxu1 %v3251_v22  ;;  %2427 = vmatpush1.bf16.msra.mxu0 %v2426_v40  ;;  %v3317_v50 = vpack.c.bf16 %v377_v48, %v374_v47  ;;  %v380_v53 = vld [vmem:[#allocation3 + $0x128] sm:$0xff]  ;;  %v383_v54 = vld [vmem:[#allocation3 + $0x140] sm:$0xff]  ;;  %v3325_v55 = vpack.c.bf16 %v376_v52, %v373_v51  ;;  %v382_v58 = vld [vmem:[#allocation3 + $0x138] sm:$0xff]  ;;  %v3434_v37 = vshrl.u32 %v73_v36, 7 }
  0x36   :  { %2489 = vmatprep.subr.bf16.mxu0 %v3223_v7  ;;  %v3329_v56 = vpack.c.bf16 %v383_v54, %v380_v53  ;;  %v379_v57 = vld [vmem:[#allocation3 + $0x120] sm:$0xff]  ;;  %v386_v59 = vld [vmem:[#allocation3 + $0x158] sm:$0xff]  ;;  %v389_v60 = vld [vmem:[#allocation3 + $0x170] sm:$0xff] }
  0x37   :  { %2095 = vmatmul.mubr.msk.f32.gmra.mrb[4].mxu1 %vm100_vm0, %v3265_v28  ;;  %v3336_v61 = vpack.c.bf16 %v382_v58, %v379_v57  ;;  %v3340_v62 = vpack.c.bf16 %v389_v60, %v386_v59  ;;  %v385_v63 = vld [vmem:[#allocation3 + $0x150] sm:$0xff]  ;;  %v388_v1 = vld [vmem:[#allocation3 + $0x168] sm:$0xff]  ;;  %v351_v9 = vld [vmem:[#allocation3 + $0x40] sm:$0xff]  ;;  %v75_v38 = vsub.s32 0, %v3434_v37 }
  0x38   :  { %2443 = vmatpush1.bf16.msra.mxu1 %v3268_v29  ;;  %2097 = vmatprep.mubr.msk.f32.mxu1 %vm100_vm0, %v3290_v41  ;;  %v3347_v2 = vpack.c.bf16 %v388_v1, %v385_v63  ;;  %v348_v4 = vld [vmem:[#allocation3 + $0x28] sm:$0xff]  ;;  %v3359_v5 = vld [vmem:[%s3785_s5] sm:$0xff]  ;;  %v354_v10 = vld [vmem:[#allocation3 + $0x58] sm:$0xff] }
  0x39   :  { %2445 = vmatprep.subr.bf16.mxu1 %v3282_v33  ;;  %1882 = vmatmul.mubr.msk.f32.vlgmr.msra.gmra.mrb[0].mxu0 %vm100_vm0, %v3219_v3  ;;  %v345_v3 = vld [vmem:[#allocation3 + $0x10] sm:$0xff]  ;;  %v3371_v11 = vpack.c.bf16 %v354_v10, %v351_v9  ;;  %v360_v15 = vld [vmem:[#allocation3 + $0x88] sm:$0xff]  ;;  %v363_v17 = vld [vmem:[#allocation3 + $0xa0] sm:$0xff]  ;;  %v79_v10 = vsub.s32 4, %v3434_v37 }
  0x3a   :  { %2491 = vmatpush1.bf16.msra.mxu0 %v3230_v13  ;;  %195 = vmatprep.mubr.f32.mxu0 %v3137_v0  ;;  %v3361_v6 = vpack.c.bf16 %v348_v4, %v345_v3  ;;  %v366_v18 = vld [vmem:[#allocation3 + $0xb8] sm:$0xff]  ;;  %v372_v23 = vld [vmem:[#allocation3 + $0xe8] sm:$0xff]  ;;  %v375_v25 = vld [vmem:[#allocation3 + $0x100] sm:$0xff] }
  0x3b   :  { %2098 = vmatmul.mubr.msk.f32.gmra.mrb[6].mxu1 %vm100_vm0, %v3300_v43  ;;  %2493 = vmatprep.subr.bf16.mxu0 %v3233_v14  ;;  %v378_v26 = vld [vmem:[#allocation3 + $0x118] sm:$0xff]  ;;  %v384_v30 = vld [vmem:[#allocation3 + $0x148] sm:$0xff]  ;;  %v387_v32 = vld [vmem:[#allocation3 + $0x160] sm:$0xff] }
  0x3c   :  { %2447 = vmatpush1.bf16.msra.mxu1 %v3295_v42  ;;  %456 = vmatprep.mubr.f32.mxu1 %v3137_v0  ;;  %v390_v34 = vld [vmem:[#allocation3 + $0x178] sm:$0xff]  ;;  %v3457_v9 = vld [vmem:[%s3783_s3] sm:$0x77] }
  0x3d   :  { %2449 = vmatprep.subr.bf16.mxu1 %v3303_v44  ;;  %1883 = vmatmul.mubr.msk.f32.gmra.mrb[2].mxu0 %vm100_vm0, %v3228_v12  ;;  %v357_v12 = vld [vmem:[#allocation3 + $0x70] sm:$0xff]  ;;  %v3410_v35 = vpack.c.bf16 %v390_v34, %v387_v32  ;;  %v56_v39 = vld [vmem:[%s3783_s3 + $0x8] sm:$0x7]  ;;  %s3140_s3 = smov [#allocation9]  }
  0x3e   :  { %201 = vmatprep.mubr.f32.mxu0 %v3137_v0  ;;  %2495 = vmatpush1.bf16.msra.mxu0 %v3238_v19  ;;  %v3382_v16 = vpack.c.bf16 %v360_v15, %v357_v12  ;;  %v84_v40 = vrot.slane %v56_v39, %v75_v38  ;;  %v76_v12 = vrot.slane %v3457_v9, %v75_v38  ;;  %s1868_s12 = sshll.u32 %s3140_s3, 4  ;;  %s1869_s12 = int_to_ptr.vmem [resolvable:$true] %s1868_s12 }
  0x3f   :  { %2497 = vmatprep.subr.bf16.mxu0 %v3251_v22  ;;  %v80_v15 = vrot.slane %v3457_v9, %v79_v10  ;;  %s3079_s13 = scalar_lea.vmem %s1869_s12, 128  ;;  %p3084_p3 = scmp.lt.s32.totalorder %s1869_s12, %s1869_s12 }
  0x40   :  { %2451 = vmatpush1.bf16.msra.mxu1 %v3313_v49  ;;  %p3080_p2 = scmp.ne.s32.totalorder %s1869_s12, %s3079_s13  ;;  %p3085_p4 = scmp.lt.s32.totalorder %s3079_s13, %s3079_s13 }
  0x41   :  { %2453 = vmatprep.subr.bf16.mxu1 %v3317_v50  ;;  %1884 = vmatmul.mubr.msk.f32.gmra.mrb[4].mxu0 %vm100_vm0, %v3243_v20  ;;  %v3391_v20 = vpack.c.bf16 %v366_v18, %v363_v17  ;;  %v3462_v17 = vrot.slane %v76_v12, %v75_v38  ;;  %v3464_v18 = vrot.slane %v80_v15, %v75_v38 }
  0x42   :  { %207 = vmatprep.mubr.f32.mxu0 %v3137_v0  ;;  %2499 = vmatpush1.bf16.msra.mxu0 %v3268_v29  ;;  %p3086_p5 = por %p3085_p4, %p3084_p3 }
  0x43   :  { %2501 = vmatprep.subr.bf16.mxu0 %v3282_v33 }
  0x44   :  { %2455 = vmatpush1.bf16.msra.mxu1 %v3325_v55  ;;  %p3087_p6 = pnand %p3086_p5, %p3080_p2 }
  0x45   :  { %2457 = vmatprep.subr.bf16.mxu1 %v3329_v56  ;;  %1885 = vmatmul.mubr.msk.f32.gmra.mrb[6].mxu0 %vm100_vm0, %v3248_v21  ;;  %v369_v21 = vld [vmem:[#allocation3 + $0xd0] sm:$0xff] }
  0x46   :  { %213 = vmatprep.mubr.f32.mxu0 %v3137_v0  ;;  %2503 = vmatpush1.bf16.msra.mxu0 %v3295_v42  ;;  %v3398_v24 = vpack.c.bf16 %v372_v23, %v369_v21 }
  0x47   :  { %2505 = vmatprep.subr.bf16.mxu0 %v3303_v44 }
  0x48   :  { %2459 = vmatpush1.bf16.msra.mxu1 %v3336_v61 }
  0x49   :  { %2461 = vmatprep.subr.bf16.mxu1 %v3340_v62  ;;  %1886 = vmatmul.mubr.msk.f32.gmra.mrb[8].mxu0 %vm100_vm0, %v3258_v27  ;;  %v3402_v27 = vpack.c.bf16 %v378_v26, %v375_v25 }
  0x4a   :  { %219 = vmatprep.mubr.f32.mxu0 %v3137_v0  ;;  %2507 = vmatpush1.bf16.msra.mxu0 %v3313_v49 }
  0x4b   :  { %2509 = vmatprep.subr.bf16.mxu0 %v3317_v50 }
  0x4c   :  { %2463 = vmatpush1.bf16.msra.mxu1 %v3347_v2 }
  0x4d   :  { %2464 = vmatprep.subr.bf16.mxu1 %v3138_v8  ;;  %1887 = vmatmul.mubr.msk.f32.gmra.mrb[10].mxu0 %vm100_vm0, %v3265_v28  ;;  %v381_v28 = vld [vmem:[#allocation3 + $0x130] sm:$0xff] }
  0x4e   :  { %2511 = vmatpush1.bf16.msra.mxu0 %v3325_v55  ;;  %225 = vmatprep.mubr.f32.mxu0 %v3137_v0  ;;  %v3406_v31 = vpack.c.bf16 %v384_v30, %v381_v28 }
  0x4f   :  { %457 = vmatmul.mubr.f32.vlgmr.msra.gmra.mrb[8].mxu1 %v3359_v5  ;;  %2513 = vmatprep.subr.bf16.mxu0 %v3329_v56 }
  0x50   :  { %2466 = vmatpush3.bf16.msra.mxu1 %v3361_v6  ;;  %2132 = vmatprep.mubr.msk.f32.mxu1 %vm3139_vm1, %v3137_v0 }
  0x51   :  { %2467 = vmatprep.subr.bf16.mxu1 %v3138_v8  ;;  %1888 = vmatmul.mubr.msk.f32.gmra.mrb[12].mxu0 %vm100_vm0, %v3290_v41  ;;  %v99_v41 = vrot.slane %v84_v40, %v75_v38 }
  0x52   :  { %231 = vmatprep.mubr.f32.mxu0 %v3137_v0  ;;  %2515 = vmatpush1.bf16.msra.mxu0 %v3336_v61 }
  0x53   :  { %2517 = vmatprep.subr.bf16.mxu0 %v3340_v62 }
  0x54   :  { %2469 = vmatpush3.bf16.msra.mxu1 %v3371_v11 }
  0x55   :  { %2470 = vmatprep.subr.bf16.mxu1 %v3138_v8  ;;  %1889 = vmatmul.mubr.msk.f32.gmra.mrb[14].mxu0 %vm100_vm0, %v3300_v43 }
  0x56   :  { %624 = vmatprep.mubr.f32.mxu0 %v3137_v0  ;;  %2519 = vmatpush1.bf16.msra.mxu0 %v3347_v2 }
  0x57   :  { %2545 = vmatprep.subr.bf16.mxu0 %v3223_v7 }
  0x58   :  { %2472 = vmatpush3.bf16.msra.mxu1 %v3382_v16 }
  0x59   :  { %2473 = vmatprep.subr.bf16.mxu1 %v3138_v8 }
  0x5c   :  { %2475 = vmatpush3.bf16.msra.mxu1 %v3391_v20 }
  0x5d   :  { %2476 = vmatprep.subr.bf16.mxu1 %v3138_v8 }
  0x60   :  { %2478 = vmatpush3.bf16.msra.mxu1 %v3398_v24 }
  0x61   :  { %2479 = vmatprep.subr.bf16.mxu1 %v3138_v8 }
  0x64   :  { %2481 = vmatpush3.bf16.msra.mxu1 %v3402_v27 }
  0x65   :  { %2482 = vmatprep.subr.bf16.mxu1 %v3138_v8 }
  0x68   :  { %2484 = vmatpush3.bf16.msra.mxu1 %v3406_v31 }
  0x69   :  { %2485 = vmatprep.subr.bf16.mxu1 %v3138_v8 }
  0x6c   :  { %2487 = vmatpush3.bf16.msra.mxu1 %v3410_v35 }
  0x6d   :  { %2520 = vmatprep.subr.bf16.mxu1 %v3138_v8 }
  0x6f   :  { %2133 = vmatmul.mubr.f32.vlgmr.msra.gmra.mrb[10].mxu1 %v3359_v5 }
  0x70   :  { %2522 = vmatpush3.bf16.msra.mxu1 %v3361_v6  ;;  %2167 = vmatprep.mubr.msk.f32.mxu1 %vm3139_vm1, %v3137_v0 }
  0x71   :  { %2523 = vmatprep.subr.bf16.mxu1 %v3138_v8 }
  0x74   :  { %2525 = vmatpush3.bf16.msra.mxu1 %v3371_v11 }
  0x75   :  { %2526 = vmatprep.subr.bf16.mxu1 %v3138_v8 }
  0x78   :  { %2528 = vmatpush3.bf16.msra.mxu1 %v3382_v16 }
  0x79   :  { %2529 = vmatprep.subr.bf16.mxu1 %v3138_v8 }
  0x7c   :  { %2531 = vmatpush3.bf16.msra.mxu1 %v3391_v20 }
  0x7d   :  { %2532 = vmatprep.subr.bf16.mxu1 %v3138_v8 }
  0x80   :  { %2534 = vmatpush3.bf16.msra.mxu1 %v3398_v24 }
  0x81   :  { %2535 = vmatprep.subr.bf16.mxu1 %v3138_v8 }
  0x84   :  { %2537 = vmatpush3.bf16.msra.mxu1 %v3402_v27 }
  0x85   :  { %2538 = vmatprep.subr.bf16.mxu1 %v3138_v8 }
  0x88   :  { %2540 = vmatpush3.bf16.msra.mxu1 %v3406_v31 }
  0x89   :  { %2541 = vmatprep.subr.bf16.mxu1 %v3138_v8 }
  0x8c   :  { %2543 = vmatpush3.bf16.msra.mxu1 %v3410_v35 }
  0x8d   :  { %2576 = vmatprep.subr.bf16.mxu1 %v3138_v8 }
 0x102   :  { %v2090_v43 = vpop.f32.mrb[0].mxu1 }
 0x103   :  { %v3440_v45 = vadd.f32 %v2090_v43, %v99_v41  ;;  %v304_v46 = vpop.f32.mrb[1].mxu1  ;;  %v549_v43 = vsub.s32 1, %v3434_v37 }
 0x105   :  { %v3469_v38 = vrot.slane %v56_v39, %v549_v43 }
 0x106   :  { %v2093_v47 = vpop.f32.mrb[2].mxu1 }
 0x107   :  { %v3442_v48 = vadd.f32 %v2093_v47, %v99_v41  ;;  %v314_v51 = vpop.f32.mrb[3].mxu1 }
 0x108   :  { %v3444_v52 = vadd.f32 %v314_v51, %v99_v41 }
 0x10a   :  { %v2096_v53 = vpop.f32.mrb[4].mxu1 }
 0x10b   :  { %v3446_v54 = vadd.f32 %v2096_v53, %v99_v41  ;;  %v324_v57 = vpop.f32.mrb[5].mxu1 }
 0x10c   :  { %v3448_v58 = vadd.f32 %v324_v57, %v99_v41  ;;  %v191_v60 = vpop.f32.mrb[0].mxu0 }
 0x10d   :  { %v193_v3 = vpop.f32.mrb[1].mxu0  ;;  %v192_v21 = vadd.f32 %v191_v60, %v3462_v17 }
 0x10e   :  { %v2099_v59 = vpop.f32.mrb[6].mxu1  ;;  %v194_v23 = vadd.f32 %v193_v3, %v3464_v18 }
 0x10f   :  { %v3450_v63 = vadd.f32 %v2099_v59, %v99_v41  ;;  %v334_v1 = vpop.f32.mrb[7].mxu1 }
 0x110   :  { %v3452_v4 = vadd.f32 %v334_v1, %v99_v41  ;;  %v305_v1 = vadd.f32 %v304_v46, %v99_v41 }
 0x122   :  { %v458_v25 = vpop.f32.mrb[8].mxu1 }
 0x123   :  { %v533_v26 = vadd.f32 %v458_v25, %v192_v21  ;;  %v460_v28 = vpop.f32.mrb[9].mxu1 }
 0x124   :  { %v540_v30 = vadd.f32 %v460_v28, %v194_v23 }
 0x125   :  { %v1898_v32 = vmul.f32 -1.442695, %v533_v26 }
 0x126   :  { %v1899_v34 = vmul.f32 -1.442695, %v540_v30 }
 0x127   :  { %2955 = vpow2.f32 %v1898_v32 }
 0x128   :  { %2957 = vpow2.f32 %v1899_v34 }
 0x131   :  { %v2956_v36 = vpop.eup %2955 }
 0x132   :  { %v537_v40 = vadd.f32 1.0, %v2956_v36  ;;  %v2958_v47 = vpop.eup %2957 }
 0x133   :  { %v544_v51 = vadd.f32 1.0, %v2958_v47 }
 0x134   :  { %2959 = vrcp.f32 %v537_v40 }
 0x135   :  { %2961 = vrcp.f32 %v544_v51 }
 0x13e   :  { %v2960_v60 = vpop.eup %2959 }
 0x13f   :  { %v2962_v12 = vpop.eup %2961 }
 0x140   :  { %v555_v15 = vsub.f32 1.0, %v2962_v12  ;;  %v557_v25 = vmul.f32 %v2962_v12, %v3359_v5 }
 0x142   :  { %v529_v53 = vpop.f32.mrb[10].mxu1 }
 0x143   :  { %v551_v57 = vadd.f32 %v3469_v38, %v529_v53  ;;  %v2134_v59 = vpop.f32.mrb[11].mxu1 }
 0x145   :  { %v552_v3 = vmul.f32 %v2960_v60, %v551_v57 }
 0x147   :  { %v553_v10 = vadd.f32 %v552_v3, %v305_v1 }
 0x149   :  { %2963 = vtanh.f32 %v553_v10 }
 0x153   :  { %v2964_v21 = vpop.eup %2963 }
 0x154   :  { %v556_v23 = vmul.f32 %v2964_v21, %v555_v15 }
 0x156   :  { %v3473_v26 = vadd.f32 %v557_v25, %v556_v23 }
 0x158   :  { %625 = vmatmul.mubr.f32.vlgmr.msra.gmra.mrb[2].mxu0 %v3473_v26  ;;  %2168 = vmatmul.mubr.f32.vlgmr.msra.gmra.mrb[12].mxu1 %v3473_v26 }
 0x159   :  { %2547 = vmatpush1.bf16.msra.mxu0 %v3230_v13  ;;  %2578 = vmatpush3.bf16.msra.mxu1 %v3361_v6 }
 0x15a   :  { %2549 = vmatprep.subr.bf16.mxu0 %v3233_v14  ;;  %2579 = vmatprep.subr.bf16.mxu1 %v3138_v8 }
 0x15b   :  { %788 = vmatprep.mubr.f32.mxu0 %v3137_v0  ;;  %2202 = vmatprep.mubr.msk.f32.mxu1 %vm3139_vm1, %v3137_v0 }
 0x15d   :  { %2551 = vmatpush1.bf16.msra.mxu0 %v3238_v19  ;;  %2581 = vmatpush3.bf16.msra.mxu1 %v3371_v11 }
 0x15e   :  { %2553 = vmatprep.subr.bf16.mxu0 %v3251_v22  ;;  %2582 = vmatprep.subr.bf16.mxu1 %v3138_v8 }
 0x161   :  { %2555 = vmatpush1.bf16.msra.mxu0 %v3268_v29  ;;  %2584 = vmatpush3.bf16.msra.mxu1 %v3382_v16 }
 0x162   :  { %2557 = vmatprep.subr.bf16.mxu0 %v3282_v33  ;;  %2585 = vmatprep.subr.bf16.mxu1 %v3138_v8 }
 0x165   :  { %2559 = vmatpush1.bf16.msra.mxu0 %v3295_v42  ;;  %2587 = vmatpush3.bf16.msra.mxu1 %v3391_v20 }
 0x166   :  { %2561 = vmatprep.subr.bf16.mxu0 %v3303_v44  ;;  %2588 = vmatprep.subr.bf16.mxu1 %v3138_v8 }
 0x169   :  { %2563 = vmatpush1.bf16.msra.mxu0 %v3313_v49  ;;  %2590 = vmatpush3.bf16.msra.mxu1 %v3398_v24 }
 0x16a   :  { %2565 = vmatprep.subr.bf16.mxu0 %v3317_v50  ;;  %2591 = vmatprep.subr.bf16.mxu1 %v3138_v8 }
 0x16d   :  { %2567 = vmatpush1.bf16.msra.mxu0 %v3325_v55  ;;  %2593 = vmatpush3.bf16.msra.mxu1 %v3402_v27 }
 0x16e   :  { %2569 = vmatprep.subr.bf16.mxu0 %v3329_v56  ;;  %2594 = vmatprep.subr.bf16.mxu1 %v3138_v8 }
 0x171   :  { %2571 = vmatpush1.bf16.msra.mxu0 %v3336_v61  ;;  %2596 = vmatpush3.bf16.msra.mxu1 %v3406_v31 }
 0x172   :  { %2573 = vmatprep.subr.bf16.mxu0 %v3340_v62  ;;  %2597 = vmatprep.subr.bf16.mxu1 %v3138_v8 }
 0x175   :  { %2575 = vmatpush1.bf16.msra.mxu0 %v3347_v2  ;;  %2599 = vmatpush3.bf16.msra.mxu1 %v3410_v35 }
 0x176   :  { %2601 = vmatprep.subr.bf16.mxu0 %v3223_v7  ;;  %2632 = vmatprep.subr.bf16.mxu1 %v3138_v8 }
 0x22b   :  { %v626_v5 = vpop.f32.mrb[2].mxu0  ;;  %v697_v39 = vpop.f32.mrb[12].mxu1 }
 0x22c   :  { %v2916_v41 = vadd.f32 %v626_v5, %v3462_v17  ;;  %v628_v46 = vpop.f32.mrb[3].mxu0  ;;  %v2169_v28 = vpop.f32.mrb[13].mxu1  ;;  %v715_v51 = vadd.f32 %v697_v39, %v3469_v38 }
 0x22d   :  { %v2917_v32 = vadd.f32 %v628_v46, %v3464_v18 }
 0x22e   :  { %v1900_v30 = vmul.f32 -1.442695, %v2916_v41 }
 0x22f   :  { %v1901_v34 = vmul.f32 -1.442695, %v2917_v32 }
 0x230   :  { %2965 = vpow2.f32 %v1900_v30 }
 0x231   :  { %2967 = vpow2.f32 %v1901_v34 }
 0x23a   :  { %v2966_v36 = vpop.eup %2965 }
 0x23b   :  { %v705_v40 = vadd.f32 1.0, %v2966_v36  ;;  %v2968_v43 = vpop.eup %2967 }
 0x23c   :  { %v712_v47 = vadd.f32 1.0, %v2968_v43 }
 0x23d   :  { %2969 = vrcp.f32 %v705_v40 }
 0x23e   :  { %2971 = vrcp.f32 %v712_v47 }
 0x247   :  { %v2970_v53 = vpop.eup %2969 }
 0x248   :  { %v716_v57 = vmul.f32 %v2970_v53, %v715_v51  ;;  %v2972_v60 = vpop.eup %2971 }
 0x249   :  { %v719_v1 = vsub.f32 1.0, %v2972_v60  ;;  %v721_v12 = vmul.f32 %v2972_v60, %v3473_v26 }
 0x24a   :  { %v717_v59 = vadd.f32 %v716_v57, %v3440_v45 }
 0x24c   :  { %2973 = vtanh.f32 %v717_v59 }
 0x256   :  { %v2974_v3 = vpop.eup %2973 }
 0x257   :  { %v720_v10 = vmul.f32 %v2974_v3, %v719_v1 }
 0x259   :  { %v3517_v15 = vadd.f32 %v721_v12, %v720_v10 }
 0x25b   :  { %789 = vmatmul.mubr.f32.vlgmr.msra.gmra.mrb[4].mxu0 %v3517_v15  ;;  %2203 = vmatmul.mubr.f32.vlgmr.msra.gmra.mrb[14].mxu1 %v3517_v15 }
 0x25c   :  { %2603 = vmatpush1.bf16.msra.mxu0 %v3230_v13  ;;  %2634 = vmatpush3.bf16.msra.mxu1 %v3361_v6 }
 0x25d   :  { %2605 = vmatprep.subr.bf16.mxu0 %v3233_v14  ;;  %2635 = vmatprep.subr.bf16.mxu1 %v3138_v8 }
 0x25e   :  { %952 = vmatprep.mubr.f32.mxu0 %v3137_v0  ;;  %2237 = vmatprep.mubr.msk.f32.mxu1 %vm3139_vm1, %v3137_v0 }
 0x260   :  { %2607 = vmatpush1.bf16.msra.mxu0 %v3238_v19  ;;  %2637 = vmatpush3.bf16.msra.mxu1 %v3371_v11 }
 0x261   :  { %2609 = vmatprep.subr.bf16.mxu0 %v3251_v22  ;;  %2638 = vmatprep.subr.bf16.mxu1 %v3138_v8 }
 0x264   :  { %2611 = vmatpush1.bf16.msra.mxu0 %v3268_v29  ;;  %2640 = vmatpush3.bf16.msra.mxu1 %v3382_v16 }
 0x265   :  { %2613 = vmatprep.subr.bf16.mxu0 %v3282_v33  ;;  %2641 = vmatprep.subr.bf16.mxu1 %v3138_v8 }
 0x268   :  { %2615 = vmatpush1.bf16.msra.mxu0 %v3295_v42  ;;  %2643 = vmatpush3.bf16.msra.mxu1 %v3391_v20 }
 0x269   :  { %2617 = vmatprep.subr.bf16.mxu0 %v3303_v44  ;;  %2644 = vmatprep.subr.bf16.mxu1 %v3138_v8 }
 0x26c   :  { %2619 = vmatpush1.bf16.msra.mxu0 %v3313_v49  ;;  %2646 = vmatpush3.bf16.msra.mxu1 %v3398_v24 }
 0x26d   :  { %2621 = vmatprep.subr.bf16.mxu0 %v3317_v50  ;;  %2647 = vmatprep.subr.bf16.mxu1 %v3138_v8 }
 0x270   :  { %2623 = vmatpush1.bf16.msra.mxu0 %v3325_v55  ;;  %2649 = vmatpush3.bf16.msra.mxu1 %v3402_v27 }
 0x271   :  { %2625 = vmatprep.subr.bf16.mxu0 %v3329_v56  ;;  %2650 = vmatprep.subr.bf16.mxu1 %v3138_v8 }
 0x274   :  { %2627 = vmatpush1.bf16.msra.mxu0 %v3336_v61  ;;  %2652 = vmatpush3.bf16.msra.mxu1 %v3406_v31 }
 0x275   :  { %2629 = vmatprep.subr.bf16.mxu0 %v3340_v62  ;;  %2653 = vmatprep.subr.bf16.mxu1 %v3138_v8 }
 0x278   :  { %2631 = vmatpush1.bf16.msra.mxu0 %v3347_v2  ;;  %2655 = vmatpush3.bf16.msra.mxu1 %v3410_v35 }
 0x279   :  { %2657 = vmatprep.subr.bf16.mxu0 %v3223_v7  ;;  %2688 = vmatprep.subr.bf16.mxu1 %v3138_v8 }
 0x32e   :  { %v790_v45 = vpop.f32.mrb[4].mxu0  ;;  %v861_v21 = vpop.f32.mrb[14].mxu1 }
 0x32f   :  { %v2918_v23 = vadd.f32 %v790_v45, %v3462_v17  ;;  %v792_v25 = vpop.f32.mrb[5].mxu0  ;;  %v2204_v5 = vpop.f32.mrb[15].mxu1  ;;  %v879_v36 = vadd.f32 %v861_v21, %v3469_v38 }
 0x330   :  { %v2919_v41 = vadd.f32 %v792_v25, %v3464_v18 }
 0x331   :  { %v1902_v39 = vmul.f32 -1.442695, %v2918_v23 }
 0x332   :  { %v1903_v46 = vmul.f32 -1.442695, %v2919_v41 }
 0x333   :  { %2975 = vpow2.f32 %v1902_v39 }
 0x334   :  { %2977 = vpow2.f32 %v1903_v46 }
 0x33d   :  { %v2976_v28 = vpop.eup %2975 }
 0x33e   :  { %v869_v30 = vadd.f32 1.0, %v2976_v28  ;;  %v2978_v32 = vpop.eup %2977 }
 0x33f   :  { %v876_v34 = vadd.f32 1.0, %v2978_v32 }
 0x340   :  { %2979 = vrcp.f32 %v869_v30 }
 0x341   :  { %2981 = vrcp.f32 %v876_v34 }
 0x34a   :  { %v2980_v40 = vpop.eup %2979 }
 0x34b   :  { %v880_v43 = vmul.f32 %v2980_v40, %v879_v36  ;;  %v2982_v51 = vpop.eup %2981 }
 0x34c   :  { %v883_v53 = vsub.f32 1.0, %v2982_v51  ;;  %v885_v60 = vmul.f32 %v2982_v51, %v3517_v15 }
 0x34d   :  { %v881_v47 = vadd.f32 %v880_v43, %v3444_v52 }
 0x34f   :  { %2983 = vtanh.f32 %v881_v47 }
 0x359   :  { %v2984_v57 = vpop.eup %2983 }
 0x35a   :  { %v884_v59 = vmul.f32 %v2984_v57, %v883_v53 }
 0x35c   :  { %v3561_v1 = vadd.f32 %v885_v60, %v884_v59 }
 0x35e   :  { %953 = vmatmul.mubr.f32.vlgmr.msra.gmra.mrb[6].mxu0 %v3561_v1  ;;  %2238 = vmatmul.mubr.f32.vlgmr.msra.gmra.mrb[16].mxu1 %v3561_v1 }
 0x35f   :  { %2659 = vmatpush1.bf16.msra.mxu0 %v3230_v13  ;;  %2690 = vmatpush3.bf16.msra.mxu1 %v3361_v6 }
 0x360   :  { %2661 = vmatprep.subr.bf16.mxu0 %v3233_v14  ;;  %2691 = vmatprep.subr.bf16.mxu1 %v3138_v8 }
 0x361   :  { %1116 = vmatprep.mubr.f32.mxu0 %v3137_v0  ;;  %2272 = vmatprep.mubr.msk.f32.mxu1 %vm3139_vm1, %v3137_v0 }
 0x363   :  { %2663 = vmatpush1.bf16.msra.mxu0 %v3238_v19  ;;  %2693 = vmatpush3.bf16.msra.mxu1 %v3371_v11 }
 0x364   :  { %2665 = vmatprep.subr.bf16.mxu0 %v3251_v22  ;;  %2694 = vmatprep.subr.bf16.mxu1 %v3138_v8 }
 0x367   :  { %2667 = vmatpush1.bf16.msra.mxu0 %v3268_v29  ;;  %2696 = vmatpush3.bf16.msra.mxu1 %v3382_v16 }
 0x368   :  { %2669 = vmatprep.subr.bf16.mxu0 %v3282_v33  ;;  %2697 = vmatprep.subr.bf16.mxu1 %v3138_v8 }
 0x36b   :  { %2671 = vmatpush1.bf16.msra.mxu0 %v3295_v42  ;;  %2699 = vmatpush3.bf16.msra.mxu1 %v3391_v20 }
 0x36c   :  { %2673 = vmatprep.subr.bf16.mxu0 %v3303_v44  ;;  %2700 = vmatprep.subr.bf16.mxu1 %v3138_v8 }
 0x36f   :  { %2675 = vmatpush1.bf16.msra.mxu0 %v3313_v49  ;;  %2702 = vmatpush3.bf16.msra.mxu1 %v3398_v24 }
 0x370   :  { %2677 = vmatprep.subr.bf16.mxu0 %v3317_v50  ;;  %2703 = vmatprep.subr.bf16.mxu1 %v3138_v8 }
 0x373   :  { %2679 = vmatpush1.bf16.msra.mxu0 %v3325_v55  ;;  %2705 = vmatpush3.bf16.msra.mxu1 %v3402_v27 }
 0x374   :  { %2681 = vmatprep.subr.bf16.mxu0 %v3329_v56  ;;  %2706 = vmatprep.subr.bf16.mxu1 %v3138_v8 }
 0x377   :  { %2683 = vmatpush1.bf16.msra.mxu0 %v3336_v61  ;;  %2708 = vmatpush3.bf16.msra.mxu1 %v3406_v31 }
 0x378   :  { %2685 = vmatprep.subr.bf16.mxu0 %v3340_v62  ;;  %2709 = vmatprep.subr.bf16.mxu1 %v3138_v8 }
 0x37b   :  { %2687 = vmatpush1.bf16.msra.mxu0 %v3347_v2  ;;  %2711 = vmatpush3.bf16.msra.mxu1 %v3410_v35 }
 0x37c   :  { %2713 = vmatprep.subr.bf16.mxu0 %v3223_v7  ;;  %2744 = vmatprep.subr.bf16.mxu1 %v3138_v8 }
 0x431   :  { %v954_v52 = vpop.f32.mrb[6].mxu0  ;;  %v1025_v3 = vpop.f32.mrb[16].mxu1 }
 0x432   :  { %v2920_v10 = vadd.f32 %v954_v52, %v3462_v17  ;;  %v956_v12 = vpop.f32.mrb[7].mxu0  ;;  %v2239_v45 = vpop.f32.mrb[17].mxu1  ;;  %v1043_v28 = vadd.f32 %v1025_v3, %v3469_v38 }
 0x433   :  { %v2921_v23 = vadd.f32 %v956_v12, %v3464_v18 }
 0x434   :  { %v1904_v21 = vmul.f32 -1.442695, %v2920_v10 }
 0x435   :  { %v1905_v25 = vmul.f32 -1.442695, %v2921_v23 }
 0x436   :  { %2985 = vpow2.f32 %v1904_v21 }
 0x437   :  { %2987 = vpow2.f32 %v1905_v25 }
 0x440   :  { %v2986_v5 = vpop.eup %2985 }
 0x441   :  { %v1033_v39 = vadd.f32 1.0, %v2986_v5  ;;  %v2988_v41 = vpop.eup %2987 }
 0x442   :  { %v1040_v46 = vadd.f32 1.0, %v2988_v41 }
 0x443   :  { %2989 = vrcp.f32 %v1033_v39 }
 0x444   :  { %2991 = vrcp.f32 %v1040_v46 }
 0x44d   :  { %v2990_v30 = vpop.eup %2989 }
 0x44e   :  { %v1044_v32 = vmul.f32 %v2990_v30, %v1043_v28  ;;  %v2992_v36 = vpop.eup %2991 }
 0x44f   :  { %v1047_v40 = vsub.f32 1.0, %v2992_v36  ;;  %v1049_v51 = vmul.f32 %v2992_v36, %v3561_v1 }
 0x450   :  { %v1045_v34 = vadd.f32 %v1044_v32, %v3442_v48 }
 0x452   :  { %2993 = vtanh.f32 %v1045_v34 }
 0x45c   :  { %v2994_v43 = vpop.eup %2993 }
 0x45d   :  { %v1048_v47 = vmul.f32 %v2994_v43, %v1047_v40 }
 0x45f   :  { %v3605_v53 = vadd.f32 %v1049_v51, %v1048_v47 }
 0x461   :  { %1117 = vmatmul.mubr.f32.vlgmr.msra.gmra.mrb[8].mxu0 %v3605_v53  ;;  %2273 = vmatmul.mubr.f32.vlgmr.msra.gmra.mrb[18].mxu1 %v3605_v53 }
 0x462   :  { %2715 = vmatpush1.bf16.msra.mxu0 %v3230_v13  ;;  %2746 = vmatpush3.bf16.msra.mxu1 %v3361_v6 }
 0x463   :  { %2717 = vmatprep.subr.bf16.mxu0 %v3233_v14  ;;  %2747 = vmatprep.subr.bf16.mxu1 %v3138_v8 }
 0x464   :  { %1280 = vmatprep.mubr.f32.mxu0 %v3137_v0  ;;  %2307 = vmatprep.mubr.msk.f32.mxu1 %vm3139_vm1, %v3137_v0 }
 0x466   :  { %2719 = vmatpush1.bf16.msra.mxu0 %v3238_v19  ;;  %2749 = vmatpush3.bf16.msra.mxu1 %v3371_v11 }
 0x467   :  { %2721 = vmatprep.subr.bf16.mxu0 %v3251_v22  ;;  %2750 = vmatprep.subr.bf16.mxu1 %v3138_v8 }
 0x46a   :  { %2723 = vmatpush1.bf16.msra.mxu0 %v3268_v29  ;;  %2752 = vmatpush3.bf16.msra.mxu1 %v3382_v16 }
 0x46b   :  { %2725 = vmatprep.subr.bf16.mxu0 %v3282_v33  ;;  %2753 = vmatprep.subr.bf16.mxu1 %v3138_v8 }
 0x46e   :  { %2727 = vmatpush1.bf16.msra.mxu0 %v3295_v42  ;;  %2755 = vmatpush3.bf16.msra.mxu1 %v3391_v20 }
 0x46f   :  { %2729 = vmatprep.subr.bf16.mxu0 %v3303_v44  ;;  %2756 = vmatprep.subr.bf16.mxu1 %v3138_v8 }
 0x472   :  { %2731 = vmatpush1.bf16.msra.mxu0 %v3313_v49  ;;  %2758 = vmatpush3.bf16.msra.mxu1 %v3398_v24 }
 0x473   :  { %2733 = vmatprep.subr.bf16.mxu0 %v3317_v50  ;;  %2759 = vmatprep.subr.bf16.mxu1 %v3138_v8 }
 0x476   :  { %2735 = vmatpush1.bf16.msra.mxu0 %v3325_v55  ;;  %2761 = vmatpush3.bf16.msra.mxu1 %v3402_v27 }
 0x477   :  { %2737 = vmatprep.subr.bf16.mxu0 %v3329_v56  ;;  %2762 = vmatprep.subr.bf16.mxu1 %v3138_v8 }
 0x47a   :  { %2739 = vmatpush1.bf16.msra.mxu0 %v3336_v61  ;;  %2764 = vmatpush3.bf16.msra.mxu1 %v3406_v31 }
 0x47b   :  { %2741 = vmatprep.subr.bf16.mxu0 %v3340_v62  ;;  %2765 = vmatprep.subr.bf16.mxu1 %v3138_v8 }
 0x47e   :  { %2743 = vmatpush1.bf16.msra.mxu0 %v3347_v2  ;;  %2767 = vmatpush3.bf16.msra.mxu1 %v3410_v35 }
 0x47f   :  { %2769 = vmatprep.subr.bf16.mxu0 %v3223_v7  ;;  %2800 = vmatprep.subr.bf16.mxu1 %v3138_v8 }
 0x534   :  { %v1118_v48 = vpop.f32.mrb[8].mxu0  ;;  %v1189_v57 = vpop.f32.mrb[18].mxu1 }
 0x535   :  { %v2922_v59 = vadd.f32 %v1118_v48, %v3462_v17  ;;  %v1120_v60 = vpop.f32.mrb[9].mxu0  ;;  %v2274_v52 = vpop.f32.mrb[19].mxu1  ;;  %v1207_v5 = vadd.f32 %v1189_v57, %v3469_v38 }
 0x536   :  { %v2923_v10 = vadd.f32 %v1120_v60, %v3464_v18 }
 0x537   :  { %v1906_v3 = vmul.f32 -1.442695, %v2922_v59 }
 0x538   :  { %v1907_v12 = vmul.f32 -1.442695, %v2923_v10 }
 0x539   :  { %2995 = vpow2.f32 %v1906_v3 }
 0x53a   :  { %2997 = vpow2.f32 %v1907_v12 }
 0x543   :  { %v2996_v45 = vpop.eup %2995 }
 0x544   :  { %v1197_v21 = vadd.f32 1.0, %v2996_v45  ;;  %v2998_v23 = vpop.eup %2997 }
 0x545   :  { %v1204_v25 = vadd.f32 1.0, %v2998_v23 }
 0x546   :  { %2999 = vrcp.f32 %v1197_v21 }
 0x547   :  { %3001 = vrcp.f32 %v1204_v25 }
 0x550   :  { %v3000_v39 = vpop.eup %2999 }
 0x551   :  { %v1208_v41 = vmul.f32 %v3000_v39, %v1207_v5  ;;  %v3002_v28 = vpop.eup %3001 }
 0x552   :  { %v1211_v30 = vsub.f32 1.0, %v3002_v28  ;;  %v1213_v36 = vmul.f32 %v3002_v28, %v3605_v53 }
 0x553   :  { %v1209_v46 = vadd.f32 %v1208_v41, %v3448_v58 }
 0x555   :  { %3003 = vtanh.f32 %v1209_v46 }
 0x55f   :  { %v3004_v32 = vpop.eup %3003 }
 0x560   :  { %v1212_v34 = vmul.f32 %v3004_v32, %v1211_v30 }
 0x562   :  { %v3649_v40 = vadd.f32 %v1213_v36, %v1212_v34  ;;  %v1721_v34 = vld [vmem:[#allocation6 + $0x20] sm:$0xff]  ;;  %v1722_v36 = vld [vmem:[#allocation6 + $0x28] sm:$0xff] }
 0x564   :  { %1281 = vmatmul.mubr.f32.vlgmr.msra.gmra.mrb[10].mxu0 %v3649_v40  ;;  %2308 = vmatmul.mubr.f32.vlgmr.msra.gmra.mrb[20].mxu1 %v3649_v40 }
 0x565   :  { %2771 = vmatpush1.bf16.msra.mxu0 %v3230_v13  ;;  %2802 = vmatpush3.bf16.msra.mxu1 %v3361_v6 }
 0x566   :  { %2773 = vmatprep.subr.bf16.mxu0 %v3233_v14  ;;  %2803 = vmatprep.subr.bf16.mxu1 %v3138_v8 }
 0x567   :  { %1444 = vmatprep.mubr.f32.mxu0 %v3137_v0  ;;  %2342 = vmatprep.mubr.msk.f32.mxu1 %vm3139_vm1, %v3137_v0 }
 0x569   :  { %2775 = vmatpush1.bf16.msra.mxu0 %v3238_v19  ;;  %2805 = vmatpush3.bf16.msra.mxu1 %v3371_v11 }
 0x56a   :  { %2777 = vmatprep.subr.bf16.mxu0 %v3251_v22  ;;  %2806 = vmatprep.subr.bf16.mxu1 %v3138_v8 }
 0x56d   :  { %2779 = vmatpush1.bf16.msra.mxu0 %v3268_v29  ;;  %2808 = vmatpush3.bf16.msra.mxu1 %v3382_v16 }
 0x56e   :  { %2781 = vmatprep.subr.bf16.mxu0 %v3282_v33  ;;  %2809 = vmatprep.subr.bf16.mxu1 %v3138_v8 }
 0x571   :  { %2783 = vmatpush1.bf16.msra.mxu0 %v3295_v42  ;;  %2811 = vmatpush3.bf16.msra.mxu1 %v3391_v20 }
 0x572   :  { %2785 = vmatprep.subr.bf16.mxu0 %v3303_v44  ;;  %2812 = vmatprep.subr.bf16.mxu1 %v3138_v8 }
 0x575   :  { %2787 = vmatpush1.bf16.msra.mxu0 %v3313_v49  ;;  %2814 = vmatpush3.bf16.msra.mxu1 %v3398_v24 }
 0x576   :  { %2789 = vmatprep.subr.bf16.mxu0 %v3317_v50  ;;  %2815 = vmatprep.subr.bf16.mxu1 %v3138_v8 }
 0x579   :  { %2791 = vmatpush1.bf16.msra.mxu0 %v3325_v55  ;;  %2817 = vmatpush3.bf16.msra.mxu1 %v3402_v27 }
 0x57a   :  { %2793 = vmatprep.subr.bf16.mxu0 %v3329_v56  ;;  %2818 = vmatprep.subr.bf16.mxu1 %v3138_v8 }
 0x57d   :  { %2795 = vmatpush1.bf16.msra.mxu0 %v3336_v61  ;;  %2820 = vmatpush3.bf16.msra.mxu1 %v3406_v31 }
 0x57e   :  { %2797 = vmatprep.subr.bf16.mxu0 %v3340_v62  ;;  %2821 = vmatprep.subr.bf16.mxu1 %v3138_v8 }
 0x581   :  { %2799 = vmatpush1.bf16.msra.mxu0 %v3347_v2  ;;  %2823 = vmatpush3.bf16.msra.mxu1 %v3410_v35 }
 0x582   :  { %2825 = vmatprep.subr.bf16.mxu0 %v3223_v7  ;;  %2856 = vmatprep.subr.bf16.mxu1 %v3138_v8 }
 0x637   :  { %v1282_v58 = vpop.f32.mrb[10].mxu0  ;;  %v1353_v43 = vpop.f32.mrb[20].mxu1 }
 0x638   :  { %v2924_v47 = vadd.f32 %v1282_v58, %v3462_v17  ;;  %v1284_v51 = vpop.f32.mrb[11].mxu0  ;;  %v2309_v48 = vpop.f32.mrb[21].mxu1  ;;  %v1371_v7 = vadd.f32 %v1353_v43, %v3469_v38  ;;  %v1723_v58 = vld [vmem:[#allocation6 + $0x30] sm:$0xff]  ;;  %v1724_v43 = vld [vmem:[#allocation6 + $0x38] sm:$0xff] }
 0x639   :  { %v2925_v59 = vadd.f32 %v1284_v51, %v3464_v18  ;;  %v1725_v51 = vld [vmem:[#allocation6 + $0x40] sm:$0xff]  ;;  %v1726_v48 = vld [vmem:[#allocation6 + $0x48] sm:$0xff] }
 0x63a   :  { %v1908_v57 = vmul.f32 -1.442695, %v2924_v47  ;;  %v2892_v47 = vpack.c.bf16 %v1724_v43, %v1723_v58 }
 0x63b   :  { %v1909_v60 = vmul.f32 -1.442695, %v2925_v59  ;;  %v1727_v59 = vld [vmem:[#allocation6 + $0x50] sm:$0xff] }
 0x63c   :  { %3005 = vpow2.f32 %v1908_v57  ;;  %v2896_v57 = vpack.c.bf16 %v1726_v48, %v1725_v51 }
 0x63d   :  { %3007 = vpow2.f32 %v1909_v60  ;;  %v1728_v60 = vld [vmem:[#allocation6 + $0x58] sm:$0xff] }
 0x646   :  { %v3006_v52 = vpop.eup %3005 }
 0x647   :  { %v1361_v3 = vadd.f32 1.0, %v3006_v52  ;;  %v3008_v10 = vpop.eup %3007  ;;  %v2900_v52 = vpack.c.bf16 %v1728_v60, %v1727_v59 }
 0x648   :  { %v1368_v12 = vadd.f32 1.0, %v3008_v10  ;;  %v1730_v10 = vld [vmem:[#allocation6 + $0x68] sm:$0xff] }
 0x649   :  { %3009 = vrcp.f32 %v1361_v3  ;;  %v1729_v3 = vld [vmem:[#allocation6 + $0x60] sm:$0xff] }
 0x64a   :  { %3011 = vrcp.f32 %v1368_v12  ;;  %v1731_v12 = vld [vmem:[#allocation6 + $0x70] sm:$0xff] }
 0x653   :  { %v3010_v45 = vpop.eup %3009 }
 0x654   :  { %v1372_v21 = vmul.f32 %v3010_v45, %v1371_v7  ;;  %v3012_v25 = vpop.eup %3011  ;;  %v1732_v7 = vld [vmem:[#allocation6 + $0x78] sm:$0xff] }
 0x655   :  { %v1375_v5 = vsub.f32 1.0, %v3012_v25  ;;  %v1377_v46 = vmul.f32 %v3012_v25, %v3649_v40  ;;  %v2908_v45 = vpack.c.bf16 %v1732_v7, %v1731_v12 }
 0x656   :  { %v1373_v23 = vadd.f32 %v1372_v21, %v3446_v54 }
 0x658   :  { %3013 = vtanh.f32 %v1373_v23 }
 0x662   :  { %v3014_v39 = vpop.eup %3013 }
 0x663   :  { %v1376_v41 = vmul.f32 %v3014_v39, %v1375_v5 }
 0x665   :  { %v3693_v28 = vadd.f32 %v1377_v46, %v1376_v41 }
 0x667   :  { %1445 = vmatmul.mubr.f32.vlgmr.msra.gmra.mrb[12].mxu0 %v3693_v28  ;;  %2343 = vmatmul.mubr.f32.vlgmr.msra.gmra.mrb[22].mxu1 %v3693_v28 }
 0x668   :  { %2827 = vmatpush1.bf16.msra.mxu0 %v3230_v13  ;;  %2858 = vmatpush3.bf16.msra.mxu1 %v3361_v6  ;;  %v1718_v13 = vld [vmem:[#allocation6 + $0x8] sm:$0xff] }
 0x669   :  { %2829 = vmatprep.subr.bf16.mxu0 %v3233_v14  ;;  %2859 = vmatprep.subr.bf16.mxu1 %v3138_v8 }
 0x66a   :  { %1608 = vmatprep.mubr.f32.mxu0 %v3137_v0  ;;  %2377 = vmatprep.mubr.msk.f32.mxu1 %vm3139_vm1, %v3137_v0  ;;  %v1717_v0 = vld [vmem:[#allocation6] sm:$0xff] }
 0x66b   :  { %v2880_v14 = vpack.c.bf16 %v1718_v13, %v1717_v0 }
 0x66c   :  { %2831 = vmatpush1.bf16.msra.mxu0 %v3238_v19  ;;  %2861 = vmatpush3.bf16.msra.mxu1 %v3371_v11 }
 0x66d   :  { %2833 = vmatprep.subr.bf16.mxu0 %v3251_v22  ;;  %2862 = vmatprep.subr.bf16.mxu1 %v3138_v8 }
 0x670   :  { %2835 = vmatpush1.bf16.msra.mxu0 %v3268_v29  ;;  %2864 = vmatpush3.bf16.msra.mxu1 %v3382_v16 }
 0x671   :  { %2837 = vmatprep.subr.bf16.mxu0 %v3282_v33  ;;  %2865 = vmatprep.subr.bf16.mxu1 %v3138_v8 }
 0x674   :  { %2839 = vmatpush1.bf16.msra.mxu0 %v3295_v42  ;;  %2867 = vmatpush3.bf16.msra.mxu1 %v3391_v20 }
 0x675   :  { %2841 = vmatprep.subr.bf16.mxu0 %v3303_v44  ;;  %2868 = vmatprep.subr.bf16.mxu1 %v3138_v8 }
 0x678   :  { %2843 = vmatpush1.bf16.msra.mxu0 %v3313_v49  ;;  %2870 = vmatpush3.bf16.msra.mxu1 %v3398_v24 }
 0x679   :  { %2845 = vmatprep.subr.bf16.mxu0 %v3317_v50  ;;  %2871 = vmatprep.subr.bf16.mxu1 %v3138_v8 }
 0x67c   :  { %2847 = vmatpush1.bf16.msra.mxu0 %v3325_v55  ;;  %2873 = vmatpush3.bf16.msra.mxu1 %v3402_v27  ;;  %v1719_v27 = vld [vmem:[#allocation6 + $0x10] sm:$0xff] }
 0x67d   :  { %2849 = vmatprep.subr.bf16.mxu0 %v3329_v56  ;;  %2874 = vmatprep.subr.bf16.mxu1 %v3138_v8 }
 0x680   :  { %2851 = vmatpush1.bf16.msra.mxu0 %v3336_v61  ;;  %2876 = vmatpush3.bf16.msra.mxu1 %v3406_v31  ;;  %v1720_v31 = vld [vmem:[#allocation6 + $0x18] sm:$0xff] }
 0x681   :  { %2853 = vmatprep.subr.bf16.mxu0 %v3340_v62  ;;  %2877 = vmatprep.subr.bf16.mxu1 %v3138_v8  ;;  %v2884_v32 = vpack.c.bf16 %v1720_v31, %v1719_v27 }
 0x684   :  { %2855 = vmatpush1.bf16.msra.mxu0 %v3347_v2  ;;  %2879 = vmatpush3.bf16.msra.mxu1 %v3410_v35 }
 0x685   :  { %2881 = vmatprep.subr.bf16.mxu0 %v2880_v14 }
 0x73a   :  { %v1446_v19 = vpop.f32.mrb[12].mxu0  ;;  %v1517_v22 = vpop.f32.mrb[22].mxu1 }
 0x73b   :  { %v2926_v29 = vadd.f32 %v1446_v19, %v3462_v17  ;;  %v1448_v33 = vpop.f32.mrb[13].mxu0  ;;  %v2344_v42 = vpop.f32.mrb[23].mxu1  ;;  %v1535_v2 = vadd.f32 %v1517_v22, %v3469_v38 }
 0x73c   :  { %v2927_v49 = vadd.f32 %v1448_v33, %v3464_v18 }
 0x73d   :  { %v1910_v44 = vmul.f32 -1.442695, %v2926_v29 }
 0x73e   :  { %v1911_v50 = vmul.f32 -1.442695, %v2927_v49 }
 0x73f   :  { %3015 = vpow2.f32 %v1910_v44 }
 0x740   :  { %3017 = vpow2.f32 %v1911_v50 }
 0x749   :  { %v3016_v55 = vpop.eup %3015 }
 0x74a   :  { %v1525_v56 = vadd.f32 1.0, %v3016_v55  ;;  %v3018_v61 = vpop.eup %3017 }
 0x74b   :  { %v1532_v62 = vadd.f32 1.0, %v3018_v61 }
 0x74c   :  { %3019 = vrcp.f32 %v1525_v56 }
 0x74d   :  { %3021 = vrcp.f32 %v1532_v62 }
 0x756   :  { %v3020_v6 = vpop.eup %3019 }
 0x757   :  { %v1536_v8 = vmul.f32 %v3020_v6, %v1535_v2  ;;  %v3022_v16 = vpop.eup %3021 }
 0x758   :  { %v1539_v20 = vsub.f32 1.0, %v3022_v16  ;;  %v1541_v54 = vmul.f32 %v3022_v16, %v3693_v28 }
 0x759   :  { %v1537_v11 = vadd.f32 %v1536_v8, %v3452_v4  ;;  %v2888_v4 = vpack.c.bf16 %v1722_v36, %v1721_v34 }
 0x75b   :  { %3023 = vtanh.f32 %v1537_v11 }
 0x765   :  { %v3024_v24 = vpop.eup %3023 }
 0x766   :  { %v1540_v35 = vmul.f32 %v3024_v24, %v1539_v20 }
 0x768   :  { %v3735_v30 = vadd.f32 %v1541_v54, %v1540_v35 }
 0x76a   :  { %1609 = vmatmul.mubr.f32.vlgmr.msra.gmra.mrb[14].mxu0 %v3735_v30  ;;  %2378 = vmatmul.mubr.f32.vlgmr.msra.gmra.mrb[24].mxu1 %v3735_v30 }
 0x76b   :  { %2883 = vmatpush3.bf16.msra.mxu0 %v2880_v14  ;;  %2412 = vmatprep.mubr.f32.mxu0 %v3473_v26  ;;  %v2904_v26 = vpack.c.bf16 %v1730_v10, %v1729_v3 }
 0x76c   :  { %2885 = vmatprep.subr.bf16.mxu0 %v2884_v32 }
 0x76f   :  { %2887 = vmatpush3.bf16.msra.mxu0 %v2884_v32 }
 0x770   :  { %2889 = vmatprep.subr.bf16.mxu0 %v2888_v4 }
 0x773   :  { %2891 = vmatpush3.bf16.msra.mxu0 %v2888_v4 }
 0x774   :  { %2893 = vmatprep.subr.bf16.mxu0 %v2892_v47 }
 0x777   :  { %2895 = vmatpush3.bf16.msra.mxu0 %v2892_v47 }
 0x778   :  { %2897 = vmatprep.subr.bf16.mxu0 %v2896_v57 }
 0x77b   :  { %2899 = vmatpush3.bf16.msra.mxu0 %v2896_v57 }
 0x77c   :  { %2901 = vmatprep.subr.bf16.mxu0 %v2900_v52 }
 0x77f   :  { %2903 = vmatpush3.bf16.msra.mxu0 %v2900_v52 }
 0x780   :  { %2905 = vmatprep.subr.bf16.mxu0 %v2904_v26 }
 0x783   :  { %2907 = vmatpush3.bf16.msra.mxu0 %v2904_v26 }
 0x784   :  { %2909 = vmatprep.subr.bf16.mxu0 %v2908_v45 }
 0x787   :  { %2911 = vmatpush3.bf16.msra.mxu0 %v2908_v45 }
 0x78a   :  { %2413 = vmatmul.mubr.f32.vlgmr.msra.gmra.mrb[16].mxu0 %v3517_v15 }
 0x78b   :  { %2415 = vmatprep.mubr.f32.mxu0 %v3561_v1 }
 0x78e   :  { %2416 = vmatmul.mubr.f32.gmra.mrb[18].mxu0 %v3605_v53 }
 0x78f   :  { %2418 = vmatprep.mubr.f32.mxu0 %v3649_v40 }
 0x792   :  { %2419 = vmatmul.mubr.f32.gmra.mrb[20].mxu0 %v3693_v28  ;;  %v1735_v28 = vsub.s32 2, %v3434_v37 }
 0x793   :  { %2421 = vmatprep.mubr.f32.mxu0 %v3735_v30 }
 0x83d   :  { %v1610_v21 = vpop.f32.mrb[14].mxu0  ;;  %v1681_v23 = vpop.f32.mrb[24].mxu1 }
 0x83e   :  { %v2928_v25 = vadd.f32 %v1610_v21, %v3462_v17  ;;  %v1612_v5 = vpop.f32.mrb[15].mxu0  ;;  %v2379_v39 = vpop.f32.mrb[25].mxu1  ;;  %v1699_v13 = vadd.f32 %v1681_v23, %v3469_v38  ;;  %v1736_v17 = vrot.slane %v3457_v9, %v1735_v28 }
 0x83f   :  { %v2929_v46 = vadd.f32 %v1612_v5, %v3464_v18 }
 0x840   :  { %v1912_v41 = vmul.f32 -1.442695, %v2928_v25 }
 0x841   :  { %v1913_v15 = vmul.f32 -1.442695, %v2929_v46 }
 0x842   :  { %3025 = vpow2.f32 %v1912_v41 }
 0x843   :  { %3027 = vpow2.f32 %v1913_v15 }
 0x84c   :  { %v3026_v1 = vpop.eup %3025 }
 0x84d   :  { %v1689_v53 = vadd.f32 1.0, %v3026_v1  ;;  %v3028_v40 = vpop.eup %3027 }
 0x84e   :  { %v1696_v0 = vadd.f32 1.0, %v3028_v40 }
 0x84f   :  { %3029 = vrcp.f32 %v1689_v53 }
 0x850   :  { %3031 = vrcp.f32 %v1696_v0 }
 0x859   :  { %v3030_v14 = vpop.eup %3029 }
 0x85a   :  { %v1700_v19 = vmul.f32 %v3030_v14, %v1699_v13  ;;  %v3032_v55 = vpop.eup %3031 }
 0x85b   :  { %v1703_v62 = vsub.f32 1.0, %v3032_v55  ;;  %v1705_v6 = vmul.f32 %v3032_v55, %v3735_v30 }
 0x85c   :  { %v1701_v22 = vadd.f32 %v1700_v19, %v3450_v63 }
 0x85d   :  { %v2414_v18 = vpop.f32.mrb[16].mxu0 }
 0x85e   :  { %3033 = vtanh.f32 %v1701_v22  ;;  %v1809_v29 = vadd.f32 %v2414_v18, %v1736_v17  ;;  %v1803_v33 = vpop.f32.mrb[17].mxu0 }
 0x85f   :  { %v1804_v42 = vadd.f32 %v1803_v33, %v1736_v17 }
 0x860   :  { %1843 = vst [vmem:[#allocation8 + $0x8] sm:$0xff] %v1809_v29 }
 0x861   :  { %1842 = vst [vmem:[#allocation8] sm:$0xff] %v1804_v42  ;;  %v2417_v44 = vpop.f32.mrb[18].mxu0 }
 0x862   :  { %v1819_v49 = vadd.f32 %v2417_v44, %v1736_v17  ;;  %v1813_v50 = vpop.f32.mrb[19].mxu0 }
 0x863   :  { %v1814_v37 = vadd.f32 %v1813_v50, %v1736_v17 }
 0x864   :  { %1845 = vst [vmem:[#allocation8 + $0x18] sm:$0xff] %v1819_v49 }
 0x865   :  { %1844 = vst [vmem:[#allocation8 + $0x10] sm:$0xff] %v1814_v37  ;;  %v2420_v38 = vpop.f32.mrb[20].mxu0 }
 0x866   :  { %v1829_v56 = vadd.f32 %v2420_v38, %v1736_v17  ;;  %v1823_v61 = vpop.f32.mrb[21].mxu0 }
 0x867   :  { %v1824_v9 = vadd.f32 %v1823_v61, %v1736_v17 }
 0x868   :  { %v3034_v63 = vpop.eup %3033  ;;  %1847 = vst [vmem:[#allocation8 + $0x28] sm:$0xff] %v1829_v56 }
 0x869   :  { %1846 = vst [vmem:[#allocation8 + $0x20] sm:$0xff] %v1824_v9  ;;  %v1704_v2 = vmul.f32 %v3034_v63, %v1703_v62 }
 0x86b   :  { %v1706_v8 = vadd.f32 %v1705_v6, %v1704_v2 }
 0x86d   :  { %2422 = vmatmul.mubr.f32.gmra.mrb[22].mxu0 %v1706_v8  ;;  %1708 = vst [vmem:[#allocation9] sm:$0xff] %v1706_v8 }
 0x86e   :  { %3090 = shalt.err (!%p3087_p6)
}
 0x86f   :  { %s3091_s16 = scalar_lea.hbm %s3787_s7, 128 }
 0x870   :  { %p3092_p7 = scmp.ne.s32.totalorder %s3787_s7, %s3091_s16  ;;  %p3095_p8 = scmp.lt.u32.totalorder %s3091_s16, %s3787_s7 }
 0x872   :  { %p3097_p9 = pnand %p3095_p8, %p3092_p7 }
 0x874   :  { %3100 = shalt.err (!%p3097_p9)
}
 0x875   :  { %1871 = dma.vmem_to_hbm [thread:$0]  %s1869_s12, 128, %s3787_s7, [#allocation10]  }
 0x876   :  { %s3141_s23 = smov [#allocation8]  }
 0x877   :  { %s1855_s24 = sshll.u32 %s3141_s23, 4  ;;  %s1856_s24 = int_to_ptr.vmem [resolvable:$true] %s1855_s24 }
 0x878   :  { %s3101_s26 = scalar_lea.vmem %s1856_s24, 1024  ;;  %p3106_p11 = scmp.lt.s32.totalorder %s1856_s24, %s1856_s24 }
 0x879   :  { %p3102_p10 = scmp.ne.s32.totalorder %s1856_s24, %s3101_s26  ;;  %p3107_p12 = scmp.lt.s32.totalorder %s3101_s26, %s3101_s26 }
 0x87b   :  { %p3108_p13 = por %p3107_p12, %p3106_p11 }
 0x87d   :  { %p3109_p0 = pnand %p3108_p13, %p3102_p10 }
 0x940   :  { %v2423_v11 = vpop.f32.mrb[22].mxu0 }
 0x941   :  { %v1839_v16 = vadd.f32 %v2423_v11, %v1736_v17  ;;  %v1833_v20 = vpop.f32.mrb[23].mxu0 }
 0x942   :  { %v1834_v24 = vadd.f32 %v1833_v20, %v1736_v17 }
 0x943   :  { %1849 = vst [vmem:[#allocation8 + $0x38] sm:$0xff] %v1839_v16 }
 0x944   :  { %1848 = vst [vmem:[#allocation8 + $0x30] sm:$0xff] %v1834_v24 }
 0x945   :  { %3112 = shalt.err (!%p3109_p0)
}
 0x946   :  { %s3113_s7 = scalar_lea.hbm %s3786_s6, 1024 }
 0x947   :  { %p3114_p1 = scmp.ne.s32.totalorder %s3786_s6, %s3113_s7  ;;  %p3117_p2 = scmp.lt.u32.totalorder %s3113_s7, %s3786_s6 }
 0x949   :  { %p3119_p3 = pnand %p3117_p2, %p3114_p1 }
 0x94b   :  { %3122 = shalt.err (!%p3119_p3)
}
 0x94c   :  { %1861 = dma.vmem_to_hbm [thread:$0]  %s1856_s24, 1024, %s3786_s6, [#allocation5], %s3135_s2, %s3135_s2, %s3136_s25  }
 0x94d   :  { %3127 = dma.done.wait [#allocation5], 1024  }
 0x94e   :  { %3128 = vsyncadd [#allocation5], 4294966272 }
 0x94f   :  { %3129 = dma.done.wait [#allocation10], 128  }
 0x950   :  { %3130 = vsyncadd [#allocation10], 4294967168 }
 0x951   :  { %1878 = vsyncpa [#allocation4], 1 }
 0x952   :  { %1879 = vsyncpa [#allocation7], 1 }
 0x953   :  { %1880 = vsyncpa [#allocation5], 1 }
 0x954   :  { %1881 = vsyncpa [#allocation10], 1 }

</bundles_post_ra>
